<compile_context>
chip_gen: v7x
topology: tpu7x:2x2x1
jax: 0.10.0
libtpu: 0.0.40
codegen_flags: <defaults>
</compile_context>

<pallas_src>
import numpy as np
import jax
import jax.numpy as jnp
from jax.experimental import pallas as pl
from jax.experimental.pallas import tpu as pltpu

H = W = 14
HW = H * W           # 196 flat spatial positions
SP = 256             # lane-padded flat spatial size (multiple of 128)
CIN = 192
COUT = 48
KH = KW = 3
NTAPS = KH * KW      # 9


def _tap_masks():
    """(9, 256) float32 0/1 masks: tap (kh,kw) is valid at output position s
    iff its source pixel (oh+kh-1, ow+kw-1) lies inside the 14x14 image."""
    oh = np.arange(HW) // W
    ow = np.arange(HW) % W
    m = np.zeros((NTAPS, SP), np.float32)
    for kh in range(KH):
        for kw in range(KW):
            dh, dw = kh - 1, kw - 1
            valid = ((oh + dh >= 0) & (oh + dh < H) &
                     (ow + dw >= 0) & (ow + dw < W))
            m[kh * KW + kw, :HW] = valid.astype(np.float32)
    return m


def prepare_weights(w_oihw):
    """One-time weight prep (init time, NOT per call):
    OIHW (48,192,3,3) -> (KH,KW,COUT,CIN) -> (9, 48, 192), cast to bf16."""
    w = jnp.transpose(w_oihw.astype(jnp.float32), (2, 3, 0, 1))
    return w.reshape(NTAPS, COUT, CIN).astype(jnp.bfloat16)


def relu_conv_kernel(mask_ref, x_ref, w_ref, o_ref, xpad_ref):
    # mask_ref: (9, 256)     f32 0/1 border masks (per tap, output coords)
    # x_ref:    (192, 196)   f32 NCHW activations, flattened (c, h*w)
    # w_ref:    (9, 48, 192) bf16 per-tap weights
    # o_ref:    (48, 196)    f32 NCHW output, flattened (cout, h*w)
    # xpad_ref: (192, 256)   bf16 scratch: ReLU'd, lane-padded activations

    # ReLU + bf16 cast + lane pad 196 -> 256.  Every lane written exactly once
    # (no redundant full-width zero fill).  Pad lanes MUST stay zero: the tap
    # rolls below rely on wrapped / out-of-image lanes contributing nothing.
    xpad_ref[:, :HW] = jnp.maximum(x_ref[...], 0.0).astype(jnp.bfloat16)
    xpad_ref[:, HW:] = jnp.zeros((CIN, SP - HW), jnp.bfloat16)

    xv = xpad_ref[...]                       # (192, 256) bf16, stationary RHS

    # Per-tap MXU matmul, result consumed in place (24 vregs, never spilled):
    #   out[:, s] = sum_t mask_t[s] * (W_t @ x)[:, s + off_t]
    acc = jnp.zeros((COUT, SP), jnp.float32)
    for kh in range(KH):
        for kw in range(KW):
            t = kh * KW + kw
            off = (kh - 1) * W + (kw - 1)            # flat-index shift of tap
            y = jnp.dot(w_ref[t], xv,
                        preferred_element_type=jnp.float32)       # (48, 256)
            if off != 0:
                # y'[:, s] = y[:, (s + off) mod 256]; wrapped lanes are masked.
                y = pltpu.roll(y, shift=(-off) % SP, axis=1)
            acc = acc + y * mask_ref[t:t + 1, :]
    o_ref[...] = acc[:, :HW].astype(o_ref.dtype)


@jax.jit
def relu_conv2d(x_nchw, w_prep, masks):
    """x_nchw: (1,192,14,14) f32; w_prep: (9,48,192) bf16 (from prepare_weights);
    masks: (9,256) f32 -> (1,48,14,14) f32."""
    x_flat = x_nchw.reshape(CIN, HW)                 # free (contiguous merge)
    out_flat = pl.pallas_call(
        relu_conv_kernel,
        out_shape=jax.ShapeDtypeStruct((COUT, HW), x_nchw.dtype),
        in_specs=[pl.BlockSpec(memory_space=pltpu.VMEM),
                  pl.BlockSpec(memory_space=pltpu.VMEM),
                  pl.BlockSpec(memory_space=pltpu.VMEM)],
        out_specs=pl.BlockSpec(memory_space=pltpu.VMEM),
        scratch_shapes=[pltpu.VMEM((CIN, SP), jnp.bfloat16)],
        cost_estimate=pl.CostEstimate(
            flops=2 * NTAPS * COUT * CIN * SP,
            bytes_accessed=(CIN * HW * 4 + NTAPS * COUT * CIN * 2
                            + COUT * HW * 4 + NTAPS * SP * 4),
            transcendentals=0),
    )(masks, x_flat, w_prep)
    return out_flat.reshape(1, COUT, H, W)           # free


if __name__ == "__main__":
    key = jax.random.PRNGKey(0)
    kx, kw_key = jax.random.split(key)
    # Input matching the module: (1, 192, 14, 14)
    x = jax.random.normal(kx, (1, CIN, H, W), dtype=jnp.float32)
    # Deterministic conv weight (kaiming-ish scale), shape (48, 192, 3, 3)
    fan_in = CIN * KH * KW
    w = jax.random.normal(kw_key, (COUT, CIN, KH, KW), dtype=jnp.float32) \
        * (2.0 / fan_in) ** 0.5

    # One-time (init-time) preparation, outside the per-call jit path.
    w_prep = prepare_weights(w)
    masks = jnp.asarray(_tap_masks())

    out = jax.block_until_ready(relu_conv2d(x, w_prep, masks))

    # Reference: f32 conv on the same bf16-rounded operands (kernel uses bf16
    # MXU inputs with f32 accumulation, so only summation order differs).
    x_bf = jnp.maximum(x, 0.0).astype(jnp.bfloat16).astype(jnp.float32)
    w_bf = w.astype(jnp.bfloat16).astype(jnp.float32)
    ref = jax.lax.conv_general_dilated(
        x_bf, w_bf,
        window_strides=(1, 1), padding=((1, 1), (1, 1)),
        dimension_numbers=("NCHW", "OIHW", "NCHW"))
    assert out.shape == (1, COUT, H, W)
    assert jnp.allclose(out, ref, atol=2e-2, rtol=2e-2), \
        float(jnp.max(jnp.abs(out - ref)))
    print("KERNEL_OK")
</pallas_src>

<mosaic_0001>
module attributes {stable_mosaic.version = 11 : i64} {
  func.func @relu_conv_kernel(%arg0: memref<9x256xf32, #tpu.memory_space<vmem>>, %arg1: memref<192x196xf32, #tpu.memory_space<vmem>>, %arg2: memref<9x48x192xbf16, #tpu.memory_space<vmem>>, %arg3: memref<48x196xf32, #tpu.memory_space<vmem>>, %arg4: memref<192x256xbf16, #tpu.memory_space<vmem>>) attributes {dimension_semantics = [], scalar_prefetch = 0 : i64, scratch_operands = 1 : i64, tpu.core_type = #tpu.core_type<tc>} {
    %c0 = arith.constant 0 : index
    %c0_0 = arith.constant 0 : index
    %0 = vector.load %arg1[%c0, %c0_0] : memref<192x196xf32, #tpu.memory_space<vmem>>, vector<192x196xf32>
    %cst = arith.constant 0.000000e+00 : f32
    %1 = vector.broadcast %cst : f32 to vector<192x196xf32>
    %2 = arith.maximumf %0, %1 : vector<192x196xf32>
    %3 = arith.truncf %2 : vector<192x196xf32> to vector<192x196xbf16>
    %c0_1 = arith.constant 0 : index
    %c0_2 = arith.constant 0 : index
    %4 = vector.load %arg4[%c0_1, %c0_2] : memref<192x256xbf16, #tpu.memory_space<vmem>>, vector<192x196xbf16>
    tpu.vector_store %arg4[%c0_1, %c0_2], %3 {strides = array<i32>} : memref<192x256xbf16, #tpu.memory_space<vmem>>, vector<192x196xbf16>,
    %cst_3 = arith.constant 0.000000e+00 : bf16
    %5 = vector.broadcast %cst_3 : bf16 to vector<192x60xbf16>
    %c0_4 = arith.constant 0 : index
    %c196 = arith.constant 196 : index
    %6 = vector.load %arg4[%c0_4, %c196] : memref<192x256xbf16, #tpu.memory_space<vmem>>, vector<192x60xbf16>
    tpu.vector_store %arg4[%c0_4, %c196], %5 {strides = array<i32>} : memref<192x256xbf16, #tpu.memory_space<vmem>>, vector<192x60xbf16>,
    %c0_5 = arith.constant 0 : index
    %c0_6 = arith.constant 0 : index
    %7 = vector.load %arg4[%c0_5, %c0_6] : memref<192x256xbf16, #tpu.memory_space<vmem>>, vector<192x256xbf16>
    %cst_7 = arith.constant 0.000000e+00 : f32
    %8 = vector.broadcast %cst_7 : f32 to vector<48x256xf32>
    %c0_8 = arith.constant 0 : index
    %c0_9 = arith.constant 0 : index
    %c0_10 = arith.constant 0 : index
    %9 = vector.load %arg2[%c0_8, %c0_9, %c0_10] : memref<9x48x192xbf16, #tpu.memory_space<vmem>>, vector<1x48x192xbf16>
    %10 = vector.shape_cast %9 : vector<1x48x192xbf16> to vector<48x192xbf16>
    %cst_11 = arith.constant dense<0.000000e+00> : vector<48x256xf32>
    %11 = tpu.matmul %10, %7, %cst_11 {dimension_numbers = #tpu.dot_dimension_numbers<[1], [0], [0], [1], [0, 0, 1, 1], [], []>} : vector<48x192xbf16>, vector<192x256xbf16>, vector<48x256xf32> -> vector<48x256xf32>
    %c15_i32 = arith.constant 15 : i32
    %12 = tpu.dynamic_rotate %11 by %c15_i32 dim 1 : vector<48x256xf32>, i32 -> vector<48x256xf32>
    %c0_12 = arith.constant 0 : index
    %c0_13 = arith.constant 0 : index
    %13 = vector.load %arg0[%c0_12, %c0_13] : memref<9x256xf32, #tpu.memory_space<vmem>>, vector<1x256xf32>
    %14 = vector.broadcast %13 : vector<1x256xf32> to vector<48x256xf32>
    %15 = arith.mulf %12, %14 : vector<48x256xf32>
    %16 = arith.addf %8, %15 : vector<48x256xf32>
    %c1 = arith.constant 1 : index
    %c0_14 = arith.constant 0 : index
    %c0_15 = arith.constant 0 : index
    %17 = vector.load %arg2[%c1, %c0_14, %c0_15] : memref<9x48x192xbf16, #tpu.memory_space<vmem>>, vector<1x48x192xbf16>
    %18 = vector.shape_cast %17 : vector<1x48x192xbf16> to vector<48x192xbf16>
    %cst_16 = arith.constant dense<0.000000e+00> : vector<48x256xf32>
    %19 = tpu.matmul %18, %7, %cst_16 {dimension_numbers = #tpu.dot_dimension_numbers<[1], [0], [0], [1], [0, 0, 1, 1], [], []>} : vector<48x192xbf16>, vector<192x256xbf16>, vector<48x256xf32> -> vector<48x256xf32>
    %c14_i32 = arith.constant 14 : i32
    %20 = tpu.dynamic_rotate %19 by %c14_i32 dim 1 : vector<48x256xf32>, i32 -> vector<48x256xf32>
    %c1_17 = arith.constant 1 : index
    %c0_18 = arith.constant 0 : index
    %21 = vector.load %arg0[%c1_17, %c0_18] : memref<9x256xf32, #tpu.memory_space<vmem>>, vector<1x256xf32>
    %22 = vector.broadcast %21 : vector<1x256xf32> to vector<48x256xf32>
    %23 = arith.mulf %20, %22 : vector<48x256xf32>
    %24 = arith.addf %16, %23 : vector<48x256xf32>
    %c2 = arith.constant 2 : index
    %c0_19 = arith.constant 0 : index
    %c0_20 = arith.constant 0 : index
    %25 = vector.load %arg2[%c2, %c0_19, %c0_20] : memref<9x48x192xbf16, #tpu.memory_space<vmem>>, vector<1x48x192xbf16>
    %26 = vector.shape_cast %25 : vector<1x48x192xbf16> to vector<48x192xbf16>
    %cst_21 = arith.constant dense<0.000000e+00> : vector<48x256xf32>
    %27 = tpu.matmul %26, %7, %cst_21 {dimension_numbers = #tpu.dot_dimension_numbers<[1], [0], [0], [1], [0, 0, 1, 1], [], []>} : vector<48x192xbf16>, vector<192x256xbf16>, vector<48x256xf32> -> vector<48x256xf32>
    %c13_i32 = arith.constant 13 : i32
    %28 = tpu.dynamic_rotate %27 by %c13_i32 dim 1 : vector<48x256xf32>, i32 -> vector<48x256xf32>
    %c2_22 = arith.constant 2 : index
    %c0_23 = arith.constant 0 : index
    %29 = vector.load %arg0[%c2_22, %c0_23] : memref<9x256xf32, #tpu.memory_space<vmem>>, vector<1x256xf32>
    %30 = vector.broadcast %29 : vector<1x256xf32> to vector<48x256xf32>
    %31 = arith.mulf %28, %30 : vector<48x256xf32>
    %32 = arith.addf %24, %31 : vector<48x256xf32>
    %c3 = arith.constant 3 : index
    %c0_24 = arith.constant 0 : index
    %c0_25 = arith.constant 0 : index
    %33 = vector.load %arg2[%c3, %c0_24, %c0_25] : memref<9x48x192xbf16, #tpu.memory_space<vmem>>, vector<1x48x192xbf16>
    %34 = vector.shape_cast %33 : vector<1x48x192xbf16> to vector<48x192xbf16>
    %cst_26 = arith.constant dense<0.000000e+00> : vector<48x256xf32>
    %35 = tpu.matmul %34, %7, %cst_26 {dimension_numbers = #tpu.dot_dimension_numbers<[1], [0], [0], [1], [0, 0, 1, 1], [], []>} : vector<48x192xbf16>, vector<192x256xbf16>, vector<48x256xf32> -> vector<48x256xf32>
    %c1_i32 = arith.constant 1 : i32
    %36 = tpu.dynamic_rotate %35 by %c1_i32 dim 1 : vector<48x256xf32>, i32 -> vector<48x256xf32>
    %c3_27 = arith.constant 3 : index
    %c0_28 = arith.constant 0 : index
    %37 = vector.load %arg0[%c3_27, %c0_28] : memref<9x256xf32, #tpu.memory_space<vmem>>, vector<1x256xf32>
    %38 = vector.broadcast %37 : vector<1x256xf32> to vector<48x256xf32>
    %39 = arith.mulf %36, %38 : vector<48x256xf32>
    %40 = arith.addf %32, %39 : vector<48x256xf32>
    %c4 = arith.constant 4 : index
    %c0_29 = arith.constant 0 : index
    %c0_30 = arith.constant 0 : index
    %41 = vector.load %arg2[%c4, %c0_29, %c0_30] : memref<9x48x192xbf16, #tpu.memory_space<vmem>>, vector<1x48x192xbf16>
    %42 = vector.shape_cast %41 : vector<1x48x192xbf16> to vector<48x192xbf16>
    %cst_31 = arith.constant dense<0.000000e+00> : vector<48x256xf32>
    %43 = tpu.matmul %42, %7, %cst_31 {dimension_numbers = #tpu.dot_dimension_numbers<[1], [0], [0], [1], [0, 0, 1, 1], [], []>} : vector<48x192xbf16>, vector<192x256xbf16>, vector<48x256xf32> -> vector<48x256xf32>
    %c4_32 = arith.constant 4 : index
    %c0_33 = arith.constant 0 : index
    %44 = vector.load %arg0[%c4_32, %c0_33] : memref<9x256xf32, #tpu.memory_space<vmem>>, vector<1x256xf32>
    %45 = vector.broadcast %44 : vector<1x256xf32> to vector<48x256xf32>
    %46 = arith.mulf %43, %45 : vector<48x256xf32>
    %47 = arith.addf %40, %46 : vector<48x256xf32>
    %c5 = arith.constant 5 : index
    %c0_34 = arith.constant 0 : index
    %c0_35 = arith.constant 0 : index
    %48 = vector.load %arg2[%c5, %c0_34, %c0_35] : memref<9x48x192xbf16, #tpu.memory_space<vmem>>, vector<1x48x192xbf16>
    %49 = vector.shape_cast %48 : vector<1x48x192xbf16> to vector<48x192xbf16>
    %cst_36 = arith.constant dense<0.000000e+00> : vector<48x256xf32>
    %50 = tpu.matmul %49, %7, %cst_36 {dimension_numbers = #tpu.dot_dimension_numbers<[1], [0], [0], [1], [0, 0, 1, 1], [], []>} : vector<48x192xbf16>, vector<192x256xbf16>, vector<48x256xf32> -> vector<48x256xf32>
    %c255_i32 = arith.constant 255 : i32
    %51 = tpu.dynamic_rotate %50 by %c255_i32 dim 1 : vector<48x256xf32>, i32 -> vector<48x256xf32>
    %c5_37 = arith.constant 5 : index
    %c0_38 = arith.constant 0 : index
    %52 = vector.load %arg0[%c5_37, %c0_38] : memref<9x256xf32, #tpu.memory_space<vmem>>, vector<1x256xf32>
    %53 = vector.broadcast %52 : vector<1x256xf32> to vector<48x256xf32>
    %54 = arith.mulf %51, %53 : vector<48x256xf32>
    %55 = arith.addf %47, %54 : vector<48x256xf32>
    %c6 = arith.constant 6 : index
    %c0_39 = arith.constant 0 : index
    %c0_40 = arith.constant 0 : index
    %56 = vector.load %arg2[%c6, %c0_39, %c0_40] : memref<9x48x192xbf16, #tpu.memory_space<vmem>>, vector<1x48x192xbf16>
    %57 = vector.shape_cast %56 : vector<1x48x192xbf16> to vector<48x192xbf16>
    %cst_41 = arith.constant dense<0.000000e+00> : vector<48x256xf32>
    %58 = tpu.matmul %57, %7, %cst_41 {dimension_numbers = #tpu.dot_dimension_numbers<[1], [0], [0], [1], [0, 0, 1, 1], [], []>} : vector<48x192xbf16>, vector<192x256xbf16>, vector<48x256xf32> -> vector<48x256xf32>
    %c243_i32 = arith.constant 243 : i32
    %59 = tpu.dynamic_rotate %58 by %c243_i32 dim 1 : vector<48x256xf32>, i32 -> vector<48x256xf32>
    %c6_42 = arith.constant 6 : index
    %c0_43 = arith.constant 0 : index
    %60 = vector.load %arg0[%c6_42, %c0_43] : memref<9x256xf32, #tpu.memory_space<vmem>>, vector<1x256xf32>
    %61 = vector.broadcast %60 : vector<1x256xf32> to vector<48x256xf32>
    %62 = arith.mulf %59, %61 : vector<48x256xf32>
    %63 = arith.addf %55, %62 : vector<48x256xf32>
    %c7 = arith.constant 7 : index
    %c0_44 = arith.constant 0 : index
    %c0_45 = arith.constant 0 : index
    %64 = vector.load %arg2[%c7, %c0_44, %c0_45] : memref<9x48x192xbf16, #tpu.memory_space<vmem>>, vector<1x48x192xbf16>
    %65 = vector.shape_cast %64 : vector<1x48x192xbf16> to vector<48x192xbf16>
    %cst_46 = arith.constant dense<0.000000e+00> : vector<48x256xf32>
    %66 = tpu.matmul %65, %7, %cst_46 {dimension_numbers = #tpu.dot_dimension_numbers<[1], [0], [0], [1], [0, 0, 1, 1], [], []>} : vector<48x192xbf16>, vector<192x256xbf16>, vector<48x256xf32> -> vector<48x256xf32>
    %c242_i32 = arith.constant 242 : i32
    %67 = tpu.dynamic_rotate %66 by %c242_i32 dim 1 : vector<48x256xf32>, i32 -> vector<48x256xf32>
    %c7_47 = arith.constant 7 : index
    %c0_48 = arith.constant 0 : index
    %68 = vector.load %arg0[%c7_47, %c0_48] : memref<9x256xf32, #tpu.memory_space<vmem>>, vector<1x256xf32>
    %69 = vector.broadcast %68 : vector<1x256xf32> to vector<48x256xf32>
    %70 = arith.mulf %67, %69 : vector<48x256xf32>
    %71 = arith.addf %63, %70 : vector<48x256xf32>
    %c8 = arith.constant 8 : index
    %c0_49 = arith.constant 0 : index
    %c0_50 = arith.constant 0 : index
    %72 = vector.load %arg2[%c8, %c0_49, %c0_50] : memref<9x48x192xbf16, #tpu.memory_space<vmem>>, vector<1x48x192xbf16>
    %73 = vector.shape_cast %72 : vector<1x48x192xbf16> to vector<48x192xbf16>
    %cst_51 = arith.constant dense<0.000000e+00> : vector<48x256xf32>
    %74 = tpu.matmul %73, %7, %cst_51 {dimension_numbers = #tpu.dot_dimension_numbers<[1], [0], [0], [1], [0, 0, 1, 1], [], []>} : vector<48x192xbf16>, vector<192x256xbf16>, vector<48x256xf32> -> vector<48x256xf32>
    %c241_i32 = arith.constant 241 : i32
    %75 = tpu.dynamic_rotate %74 by %c241_i32 dim 1 : vector<48x256xf32>, i32 -> vector<48x256xf32>
    %c8_52 = arith.constant 8 : index
    %c0_53 = arith.constant 0 : index
    %76 = vector.load %arg0[%c8_52, %c0_53] : memref<9x256xf32, #tpu.memory_space<vmem>>, vector<1x256xf32>
    %77 = vector.broadcast %76 : vector<1x256xf32> to vector<48x256xf32>
    %78 = arith.mulf %75, %77 : vector<48x256xf32>
    %79 = arith.addf %71, %78 : vector<48x256xf32>
    %80 = vector.extract_strided_slice %79 {offsets = [0, 0], sizes = [48, 196], strides = [1, 1]} : vector<48x256xf32> to vector<48x196xf32>
    %c0_54 = arith.constant 0 : index
    %c0_55 = arith.constant 0 : index
    %81 = vector.load %arg3[%c0_54, %c0_55] : memref<48x196xf32, #tpu.memory_space<vmem>>, vector<48x196xf32>
    tpu.vector_store %arg3[%c0_54, %c0_55], %80 {strides = array<i32>} : memref<48x196xf32, #tpu.memory_space<vmem>>, vector<48x196xf32>,
    return
  }
}

</mosaic_0001>

<bundles_post_ra>
// kernel: relu_conv2d.1
= control target key start
LH: loop header
LB: loop body
LE: loop exit
PB: predicated region body
PF: predicated region fallthrough
CT: control target
= control target key end

     0   :  { %vm136_vm0 = vcmask 556032   ;;  %vm160_vm1 = vcmask 1048096   ;;  %v2048_v36 = vmov 0   ;;  %vm230_vm2 = vcmask 523264   ;;  %s2049_s23 = smov 15   ;;  %s2050_s24 = smov 14   ;;  %s3435_s1 = inlined_call_operand.vmem [shape: f32[192,196], index: 1, kind: input, shape index: {}]   ;;  %s3436_s2 = inlined_call_operand.vmem [shape: bf16[9,48,192], index: 2, kind: input, shape index: {}]   ;;  %s3437_s0 = inlined_call_operand.vmem [shape: f32[9,256], index: 0, kind: input, shape index: {}]   ;;  %s3438_s3 = inlined_call_operand.vmem [shape: f32[48,196], index: 3, kind: output, shape index: {}]  }
   0x1   :  { %v16_v0 = vld [vmem:[%s3435_s1 + $0x8] sm:$0xff]  ;;  %v18_v1 = vld [vmem:[%s3435_s1 + $0x18] sm:$0xff]  ;;  %v15_v2 = vld [vmem:[%s3435_s1] sm:$0xff]  ;;  %s2052_s25 = smov 1   ;;  %s2053_s26 = smov 127  }
   0x2   :  { %v64_v3 = vmax.f32 %v16_v0, 0.0  ;;  %v66_v4 = vmax.f32 %v18_v1, 0.0  ;;  %v17_v5 = vld [vmem:[%s3435_s1 + $0x10] sm:$0xff]  ;;  %v63_v6 = vmax.f32 %v15_v2, 0.0  ;;  %v20_v7 = vld [vmem:[%s3435_s1 + $0x28] sm:$0xff]  ;;  %v22_v8 = vld [vmem:[%s3435_s1 + $0x38] sm:$0xff] }
   0x3   :  { %v65_v9 = vmax.f32 %v17_v5, 0.0  ;;  %v68_v10 = vmax.f32 %v20_v7, 0.0  ;;  %v70_v11 = vmax.f32 %v22_v8, 0.0  ;;  %v19_v12 = vld [vmem:[%s3435_s1 + $0x20] sm:$0xff]  ;;  %v21_v13 = vld [vmem:[%s3435_s1 + $0x30] sm:$0xff]  ;;  %v24_v14 = vld [vmem:[%s3435_s1 + $0x48] sm:$0xff] }
   0x4   :  { %v112_v15 = vpack.c.bf16 %v66_v4, %v64_v3  ;;  %v67_v16 = vmax.f32 %v19_v12, 0.0  ;;  %v69_v17 = vmax.f32 %v21_v13, 0.0  ;;  %v26_v18 = vld [vmem:[%s3435_s1 + $0x58] sm:$0xff]  ;;  %v72_v19 = vmax.f32 %v24_v14, 0.0  ;;  %v23_v20 = vld [vmem:[%s3435_s1 + $0x40] sm:$0xff]  ;;  %v25_v21 = vld [vmem:[%s3435_s1 + $0x50] sm:$0xff] }
   0x5   :  { %v2113_v22 = vpack.c.bf16 %v65_v9, %v63_v6  ;;  %v114_v23 = vpack.c.bf16 %v70_v11, %v68_v10  ;;  %v74_v24 = vmax.f32 %v26_v18, 0.0  ;;  %v71_v25 = vmax.f32 %v23_v20, 0.0  ;;  %v28_v26 = vld [vmem:[%s3435_s1 + $0x68] sm:$0xff]  ;;  %v30_v27 = vld [vmem:[%s3435_s1 + $0x78] sm:$0xff]  ;;  %v27_v28 = vld [vmem:[%s3435_s1 + $0x60] sm:$0xff]  ;;  %s2054_s30 = smov 115  }
   0x6   :  { %137 = vst.msk [vmem:[#allocation2 + $0x8] sm:$0xff] %vm136_vm0, %v112_v15  ;;  %v2125_v29 = vpack.c.bf16 %v69_v17, %v67_v16  ;;  %v73_v30 = vmax.f32 %v25_v21, 0.0  ;;  %v76_v31 = vmax.f32 %v28_v26, 0.0  ;;  %v78_v32 = vmax.f32 %v30_v27, 0.0  ;;  %v29_v33 = vld [vmem:[%s3435_s1 + $0x70] sm:$0xff]  ;;  %v32_v34 = vld [vmem:[%s3435_s1 + $0x88] sm:$0xff] }
   0x7   :  { %v34_v35 = vld [vmem:[%s3435_s1 + $0x98] sm:$0xff]  ;;  %161 = vst.msk [vmem:[#allocation2 + $0x8] sm:$0xff] %vm160_vm1, %v2048_v36  ;;  %v116_v37 = vpack.c.bf16 %v74_v24, %v72_v19  ;;  %v75_v38 = vmax.f32 %v27_v28, 0.0  ;;  %v77_v39 = vmax.f32 %v29_v33, 0.0  ;;  %v80_v40 = vmax.f32 %v32_v34, 0.0  ;;  %v31_v41 = vld [vmem:[%s3435_s1 + $0x80] sm:$0xff] }
   0x8   :  { %139 = vst.msk [vmem:[#allocation2 + $0x18] sm:$0xff] %vm136_vm0, %v114_v23  ;;  %v33_v42 = vld [vmem:[%s3435_s1 + $0x90] sm:$0xff]  ;;  %v36_v43 = vld [vmem:[%s3435_s1 + $0xa8] sm:$0xff]  ;;  %v2150_v44 = vpack.c.bf16 %v73_v30, %v71_v25  ;;  %v118_v45 = vpack.c.bf16 %v78_v32, %v76_v31  ;;  %v82_v46 = vmax.f32 %v34_v35, 0.0  ;;  %v79_v47 = vmax.f32 %v31_v41, 0.0  ;;  %v38_v48 = vld [vmem:[%s3435_s1 + $0xb8] sm:$0xff] }
   0x9   :  { %162 = vst.msk [vmem:[#allocation2 + $0x18] sm:$0xff] %vm160_vm1, %v2048_v36  ;;  %v35_v49 = vld [vmem:[%s3435_s1 + $0xa0] sm:$0xff]  ;;  %v37_v50 = vld [vmem:[%s3435_s1 + $0xb0] sm:$0xff]  ;;  %v2162_v51 = vpack.c.bf16 %v77_v39, %v75_v38  ;;  %v81_v52 = vmax.f32 %v33_v42, 0.0  ;;  %v84_v53 = vmax.f32 %v36_v43, 0.0  ;;  %v86_v54 = vmax.f32 %v38_v48, 0.0 }
   0xa   :  { %141 = vst.msk [vmem:[#allocation2 + $0x28] sm:$0xff] %vm136_vm0, %v116_v37  ;;  %v40_v55 = vld [vmem:[%s3435_s1 + $0xc8] sm:$0xff]  ;;  %v42_v56 = vld [vmem:[%s3435_s1 + $0xd8] sm:$0xff]  ;;  %v39_v57 = vld [vmem:[%s3435_s1 + $0xc0] sm:$0xff]  ;;  %v120_v58 = vpack.c.bf16 %v82_v46, %v80_v40  ;;  %v83_v59 = vmax.f32 %v35_v49, 0.0  ;;  %v85_v60 = vmax.f32 %v37_v50, 0.0 }
   0xb   :  { %163 = vst.msk [vmem:[#allocation2 + $0x28] sm:$0xff] %vm160_vm1, %v2048_v36  ;;  %v88_v61 = vmax.f32 %v40_v55, 0.0  ;;  %v41_v62 = vld [vmem:[%s3435_s1 + $0xd0] sm:$0xff]  ;;  %v44_v63 = vld [vmem:[%s3435_s1 + $0xe8] sm:$0xff]  ;;  %v46_v0 = vld [vmem:[%s3435_s1 + $0xf8] sm:$0xff]  ;;  %v2187_v1 = vpack.c.bf16 %v81_v52, %v79_v47  ;;  %v122_v2 = vpack.c.bf16 %v86_v54, %v84_v53  ;;  %v90_v3 = vmax.f32 %v42_v56, 0.0 }
   0xc   :  { %143 = vst.msk [vmem:[#allocation2 + $0x38] sm:$0xff] %vm136_vm0, %v118_v45  ;;  %v87_v4 = vmax.f32 %v39_v57, 0.0  ;;  %v43_v5 = vld [vmem:[%s3435_s1 + $0xe0] sm:$0xff]  ;;  %v45_v6 = vld [vmem:[%s3435_s1 + $0xf0] sm:$0xff]  ;;  %v48_v7 = vld [vmem:[%s3435_s1 + $0x108] sm:$0xff]  ;;  %v2199_v8 = vpack.c.bf16 %v85_v60, %v83_v59  ;;  %v89_v9 = vmax.f32 %v41_v62, 0.0 }
   0xd   :  { %164 = vst.msk [vmem:[#allocation2 + $0x38] sm:$0xff] %vm160_vm1, %v2048_v36  ;;  %v92_v10 = vmax.f32 %v44_v63, 0.0  ;;  %v94_v11 = vmax.f32 %v46_v0, 0.0  ;;  %v50_v12 = vld [vmem:[%s3435_s1 + $0x118] sm:$0xff]  ;;  %v47_v13 = vld [vmem:[%s3435_s1 + $0x100] sm:$0xff]  ;;  %v49_v14 = vld [vmem:[%s3435_s1 + $0x110] sm:$0xff]  ;;  %v124_v15 = vpack.c.bf16 %v90_v3, %v88_v61 }
   0xe   :  { %145 = vst.msk [vmem:[#allocation2 + $0x48] sm:$0xff] %vm136_vm0, %v120_v58  ;;  %147 = vst.msk [vmem:[#allocation2 + $0x58] sm:$0xff] %vm136_vm0, %v122_v2  ;;  %v91_v16 = vmax.f32 %v43_v5, 0.0  ;;  %v93_v17 = vmax.f32 %v45_v6, 0.0  ;;  %v96_v18 = vmax.f32 %v48_v7, 0.0  ;;  %v52_v19 = vld [vmem:[%s3435_s1 + $0x128] sm:$0xff]  ;;  %v2226_v24 = vpack.c.bf16 %v89_v9, %v87_v4 }
   0xf   :  { %165 = vst.msk [vmem:[#allocation2 + $0x48] sm:$0xff] %vm160_vm1, %v2048_v36  ;;  %v54_v20 = vld [vmem:[%s3435_s1 + $0x138] sm:$0xff]  ;;  %v51_v21 = vld [vmem:[%s3435_s1 + $0x120] sm:$0xff]  ;;  %v2222_v23 = vld [vmem:[#allocation2 + $0x8] sm:$0xff]  ;;  %v126_v25 = vpack.c.bf16 %v94_v11, %v92_v10  ;;  %v98_v26 = vmax.f32 %v50_v12, 0.0  ;;  %v95_v27 = vmax.f32 %v47_v13, 0.0 }
  0x10   :  { %166 = vst.msk [vmem:[#allocation2 + $0x58] sm:$0xff] %vm160_vm1, %v2048_v36  ;;  %v53_v28 = vld [vmem:[%s3435_s1 + $0x130] sm:$0xff]  ;;  %v56_v30 = vld [vmem:[%s3435_s1 + $0x148] sm:$0xff]  ;;  %240 = vmatprep.subr.bf16.mxu0 %v2222_v23  ;;  %421 = vmatprep.subr.bf16.mxu1 %v2222_v23  ;;  %v2236_v31 = vld [vmem:[#allocation2 + $0x18] sm:$0xff]  ;;  %v2239_v32 = vpack.c.bf16 %v93_v17, %v91_v16  ;;  %v97_v33 = vmax.f32 %v49_v14, 0.0  ;;  %v100_v34 = vmax.f32 %v52_v19, 0.0 }
  0x11   :  { %149 = vst.msk [vmem:[#allocation2 + $0x68] sm:$0xff] %vm136_vm0, %v124_v15  ;;  %v102_v35 = vmax.f32 %v54_v20, 0.0  ;;  %v58_v37 = vld [vmem:[%s3435_s1 + $0x158] sm:$0xff]  ;;  %v55_v38 = vld [vmem:[%s3435_s1 + $0x140] sm:$0xff]  ;;  %241 = vmatpush1.bf16.msra.mxu0 %v2113_v22  ;;  %422 = vmatpush1.bf16.msra.mxu1 %v2113_v22  ;;  %151 = vst.msk [vmem:[#allocation2 + $0x78] sm:$0xff] %vm136_vm0, %v126_v25  ;;  %v128_v39 = vpack.c.bf16 %v98_v26, %v96_v18  ;;  %v99_v40 = vmax.f32 %v51_v21, 0.0 }
  0x12   :  { %167 = vst.msk [vmem:[#allocation2 + $0x68] sm:$0xff] %vm160_vm1, %v2048_v36  ;;  %v101_v41 = vmax.f32 %v53_v28, 0.0  ;;  %v104_v42 = vmax.f32 %v56_v30, 0.0  ;;  %v57_v43 = vld [vmem:[%s3435_s1 + $0x150] sm:$0xff]  ;;  %v60_v45 = vld [vmem:[%s3435_s1 + $0x168] sm:$0xff]  ;;  %v62_v46 = vld [vmem:[%s3435_s1 + $0x178] sm:$0xff]  ;;  %242 = vmatprep.subr.bf16.mxu0 %v2236_v31  ;;  %423 = vmatprep.subr.bf16.mxu1 %v2236_v31  ;;  %v2265_v47 = vpack.c.bf16 %v97_v33, %v95_v27 }
  0x13   :  { %168 = vst.msk [vmem:[#allocation2 + $0x78] sm:$0xff] %vm160_vm1, %v2048_v36  ;;  %v130_v48 = vpack.c.bf16 %v102_v35, %v100_v34  ;;  %v106_v49 = vmax.f32 %v58_v37, 0.0  ;;  %v103_v50 = vmax.f32 %v55_v38, 0.0  ;;  %v59_v52 = vld [vmem:[%s3435_s1 + $0x160] sm:$0xff]  ;;  %v61_v53 = vld [vmem:[%s3435_s1 + $0x170] sm:$0xff]  ;;  %v2273_v54 = vld [vmem:[#allocation2 + $0x28] sm:$0xff] }
  0x14   :  { %153 = vst.msk [vmem:[#allocation2 + $0x88] sm:$0xff] %vm136_vm0, %v128_v39  ;;  %v2276_v55 = vpack.c.bf16 %v101_v41, %v99_v40  ;;  %v105_v56 = vmax.f32 %v57_v43, 0.0  ;;  %v108_v57 = vmax.f32 %v60_v45, 0.0  ;;  %v110_v58 = vmax.f32 %v62_v46, 0.0  ;;  %v1969_v62 = vld [vmem:[%s3436_s2 + $0x4] ss:$8 sps:$4 sm:$0xff]  }
  0x15   :  { %169 = vst.msk [vmem:[#allocation2 + $0x88] sm:$0xff] %vm160_vm1, %v2048_v36  ;;  %v132_v59 = vpack.c.bf16 %v106_v49, %v104_v42  ;;  %v107_v60 = vmax.f32 %v59_v52, 0.0  ;;  %v109_v61 = vmax.f32 %v61_v53, 0.0  ;;  %243 = vmatpush1.bf16.msra.mxu0 %v2125_v29  ;;  %424 = vmatpush1.bf16.msra.mxu1 %v2125_v29  ;;  %v1972_v3 = vld [vmem:[%s3436_s2 + $0x34] ss:$8 sps:$4 sm:$0xff]   ;;  %s2055_s4 = smov 114  }
  0x16   :  { %155 = vst.msk [vmem:[#allocation2 + $0x98] sm:$0xff] %vm136_vm0, %v130_v48  ;;  %v2288_v63 = vpack.c.bf16 %v105_v56, %v103_v50  ;;  %v134_v0 = vpack.c.bf16 %v110_v58, %v108_v57  ;;  %244 = vmatprep.subr.bf16.mxu0 %v2273_v54  ;;  %425 = vmatprep.subr.bf16.mxu1 %v2273_v54  ;;  %v2298_v4 = vld [vmem:[#allocation2 + $0x38] sm:$0xff]  ;;  %v2311_v5 = vld [vmem:[#allocation2 + $0x48] sm:$0xff]  ;;  %s2056_s11 = smov 113  }
  0x17   :  { %170 = vst.msk [vmem:[#allocation2 + $0x98] sm:$0xff] %vm160_vm1, %v2048_v36  ;;  %v2293_v2 = vpack.c.bf16 %v109_v61, %v107_v60  ;;  %1803 = vmatprep.mubr.msk.bf16.mxu0 %vm230_vm2, %v1969_v62  ;;  %1818 = vmatprep.mubr.msk.bf16.mxu1 %vm230_vm2, %v1972_v3  ;;  %v1967_v13 = vld [vmem:[%s3436_s2] ss:$8 sps:$4 sm:$0xff]   ;;  %v1970_v14 = vld [vmem:[%s3436_s2 + $0x30] ss:$8 sps:$4 sm:$0xff]  }
  0x18   :  { %157 = vst.msk [vmem:[#allocation2 + $0xa8] sm:$0xff] %vm136_vm0, %v132_v59  ;;  %159 = vst.msk [vmem:[#allocation2 + $0xb8] sm:$0xff] %vm136_vm0, %v134_v0  ;;  %v1973_v15 = vld [vmem:[%s3436_s2 + $0x14] ss:$8 sps:$4 sm:$0xff]   ;;  %v1976_v16 = vld [vmem:[%s3436_s2 + $0x44] ss:$8 sps:$4 sm:$0xff]  }
  0x19   :  { %171 = vst.msk [vmem:[#allocation2 + $0xa8] sm:$0xff] %vm160_vm1, %v2048_v36  ;;  %172 = vst.msk [vmem:[#allocation2 + $0xb8] sm:$0xff] %vm160_vm1, %v2048_v36  ;;  %245 = vmatpush1.bf16.msra.mxu0 %v2150_v44  ;;  %426 = vmatpush1.bf16.msra.mxu1 %v2150_v44  ;;  %v2317_v36 = vld [vmem:[#allocation2 + $0x58] sm:$0xff]  ;;  %v2323_v6 = vld [vmem:[#allocation2 + $0x68] sm:$0xff] }
  0x1a   :  { %246 = vmatprep.subr.bf16.mxu0 %v2298_v4  ;;  %427 = vmatprep.subr.bf16.mxu1 %v2298_v4  ;;  %v2329_v7 = vld [vmem:[#allocation2 + $0x78] sm:$0xff]  ;;  %v1978_v18 = vld [vmem:[%s3436_s2 + $0x40] ss:$8 sps:$4 sm:$0xff]   ;;  %v1979_v19 = vld [vmem:[%s3436_s2 + $0x24] ss:$8 sps:$4 sm:$0xff]  }
  0x1b   :  { %v1975_v17 = vld [vmem:[%s3436_s2 + $0x10] ss:$8 sps:$4 sm:$0xff]   ;;  %v1982_v20 = vld [vmem:[%s3436_s2 + $0x54] ss:$8 sps:$4 sm:$0xff]   ;;  %v1981_v21 = vld [vmem:[%s3436_s2 + $0x20] ss:$8 sps:$4 sm:$0xff]  }
  0x1c   :  { %v2335_v9 = vld [vmem:[#allocation2 + $0x88] sm:$0xff]  ;;  %v1984_v25 = vld [vmem:[%s3436_s2 + $0x50] ss:$8 sps:$4 sm:$0xff]   ;;  %v1990_v27 = vld [vmem:[%s3436_s2 + $0x94] ss:$8 sps:$4 sm:$0xff]  }
  0x1d   :  { %247 = vmatpush1.bf16.msra.mxu0 %v2162_v51  ;;  %428 = vmatpush1.bf16.msra.mxu1 %v2162_v51  ;;  %v1987_v26 = vld [vmem:[%s3436_s2 + $0x64] ss:$8 sps:$4 sm:$0xff]   ;;  %v1985_v28 = vld [vmem:[%s3436_s2 + $0x60] ss:$8 sps:$4 sm:$0xff]   ;;  %v1988_v30 = vld [vmem:[%s3436_s2 + $0x90] ss:$8 sps:$4 sm:$0xff]  }
  0x1e   :  { %248 = vmatprep.subr.bf16.mxu0 %v2311_v5  ;;  %429 = vmatprep.subr.bf16.mxu1 %v2311_v5  ;;  %v2339_v10 = vld [vmem:[#allocation2 + $0x98] sm:$0xff]  ;;  %v1994_v34 = vld [vmem:[%s3436_s2 + $0xa4] ss:$8 sps:$4 sm:$0xff]   ;;  %v1996_v37 = vld [vmem:[%s3436_s2 + $0xa0] ss:$8 sps:$4 sm:$0xff]  }
  0x1f   :  { %v1991_v33 = vld [vmem:[%s3436_s2 + $0x74] ss:$8 sps:$4 sm:$0xff]   ;;  %v1993_v35 = vld [vmem:[%s3436_s2 + $0x70] ss:$8 sps:$4 sm:$0xff]   ;;  %v1997_v38 = vld [vmem:[%s3436_s2 + $0x84] ss:$8 sps:$4 sm:$0xff]  }
  0x20   :  { %v2347_v11 = vld [vmem:[#allocation2 + $0xa8] sm:$0xff]  ;;  %v2353_v12 = vld [vmem:[#allocation2 + $0xb8] sm:$0xff] }
  0x21   :  { %249 = vmatpush1.bf16.msra.mxu0 %v2187_v1  ;;  %430 = vmatpush1.bf16.msra.mxu1 %v2187_v1  ;;  %v2000_v39 = vld [vmem:[%s3436_s2 + $0xb4] ss:$8 sps:$4 sm:$0xff]   ;;  %v1999_v40 = vld [vmem:[%s3436_s2 + $0x80] ss:$8 sps:$4 sm:$0xff]   ;;  %v2002_v41 = vld [vmem:[%s3436_s2 + $0xb0] ss:$8 sps:$4 sm:$0xff]  }
  0x22   :  { %250 = vmatprep.subr.bf16.mxu0 %v2317_v36  ;;  %431 = vmatprep.subr.bf16.mxu1 %v2317_v36  ;;  %v2005_v42 = vld [vmem:[%s3436_s2 + $0xc4] ss:$8 sps:$4 sm:$0xff]   ;;  %v2008_v43 = vld [vmem:[%s3436_s2 + $0xf4] ss:$8 sps:$4 sm:$0xff]   ;;  %v2003_v45 = vld [vmem:[%s3436_s2 + $0xc0] ss:$8 sps:$4 sm:$0xff]  }
  0x23   :  { %v2006_v46 = vld [vmem:[%s3436_s2 + $0xf0] ss:$8 sps:$4 sm:$0xff]   ;;  %v2009_v48 = vld [vmem:[%s3436_s2 + $0x104] ss:$8 sps:$4 sm:$0xff]   ;;  %v2015_v49 = vld [vmem:[%s3436_s2 + $0xd4] ss:$8 sps:$4 sm:$0xff]  }
  0x24   :  { %v2011_v50 = vld [vmem:[%s3436_s2 + $0x100] ss:$8 sps:$4 sm:$0xff]   ;;  %v2017_v52 = vld [vmem:[%s3436_s2 + $0xd0] ss:$8 sps:$4 sm:$0xff]   ;;  %v2012_v53 = vld [vmem:[%s3436_s2 + $0x114] ss:$8 sps:$4 sm:$0xff]  }
  0x25   :  { %251 = vmatpush1.bf16.msra.mxu0 %v2199_v8  ;;  %432 = vmatpush1.bf16.msra.mxu1 %v2199_v8  ;;  %v2018_v56 = vld [vmem:[%s3436_s2 + $0xe4] ss:$8 sps:$4 sm:$0xff]   ;;  %v2014_v57 = vld [vmem:[%s3436_s2 + $0x110] ss:$8 sps:$4 sm:$0xff]   ;;  %v2020_v58 = vld [vmem:[%s3436_s2 + $0xe0] ss:$8 sps:$4 sm:$0xff]  }
  0x26   :  { %252 = vmatprep.subr.bf16.mxu0 %v2323_v6  ;;  %433 = vmatprep.subr.bf16.mxu1 %v2323_v6  ;;  %v2023_v59 = vld [vmem:[%s3436_s2 + $0x124] ss:$8 sps:$4 sm:$0xff]   ;;  %v2026_v60 = vld [vmem:[%s3436_s2 + $0x154] ss:$8 sps:$4 sm:$0xff]   ;;  %v2021_v61 = vld [vmem:[%s3436_s2 + $0x120] ss:$8 sps:$4 sm:$0xff]  }
  0x27   :  { %v2024_v62 = vld [vmem:[%s3436_s2 + $0x150] ss:$8 sps:$4 sm:$0xff]   ;;  %v2027_v0 = vld [vmem:[%s3436_s2 + $0x134] ss:$8 sps:$4 sm:$0xff]   ;;  %v2030_v3 = vld [vmem:[%s3436_s2 + $0x164] ss:$8 sps:$4 sm:$0xff]  }
  0x29   :  { %253 = vmatpush1.bf16.msra.mxu0 %v2226_v24  ;;  %434 = vmatpush1.bf16.msra.mxu1 %v2226_v24 }
  0x2a   :  { %254 = vmatprep.subr.bf16.mxu0 %v2329_v7  ;;  %435 = vmatprep.subr.bf16.mxu1 %v2329_v7 }
  0x2d   :  { %255 = vmatpush1.bf16.msra.mxu0 %v2239_v32  ;;  %436 = vmatpush1.bf16.msra.mxu1 %v2239_v32 }
  0x2e   :  { %256 = vmatprep.subr.bf16.mxu0 %v2335_v9  ;;  %437 = vmatprep.subr.bf16.mxu1 %v2335_v9 }
  0x31   :  { %257 = vmatpush1.bf16.msra.mxu0 %v2265_v47  ;;  %438 = vmatpush1.bf16.msra.mxu1 %v2265_v47 }
  0x32   :  { %258 = vmatprep.subr.bf16.mxu0 %v2339_v10  ;;  %439 = vmatprep.subr.bf16.mxu1 %v2339_v10 }
  0x35   :  { %259 = vmatpush1.bf16.msra.mxu0 %v2276_v55  ;;  %440 = vmatpush1.bf16.msra.mxu1 %v2276_v55 }
  0x36   :  { %260 = vmatprep.subr.bf16.mxu0 %v2347_v11  ;;  %441 = vmatprep.subr.bf16.mxu1 %v2347_v11 }
  0x39   :  { %261 = vmatpush1.bf16.msra.mxu0 %v2288_v63  ;;  %442 = vmatpush1.bf16.msra.mxu1 %v2288_v63 }
  0x3a   :  { %262 = vmatprep.subr.bf16.mxu0 %v2353_v12  ;;  %443 = vmatprep.subr.bf16.mxu1 %v2353_v12 }
  0x3d   :  { %263 = vmatpush1.bf16.msra.mxu0 %v2293_v2  ;;  %444 = vmatpush1.bf16.msra.mxu1 %v2293_v2 }
  0x3e   :  { %601 = vmatprep.subr.bf16.mxu0 %v2222_v23  ;;  %781 = vmatprep.subr.bf16.mxu1 %v2222_v23 }
  0x40   :  { %273 = vmatmul.mubr.bf16.vlgmr.msra.gmra.mrb[0].mxu0 %v1967_v13  ;;  %454 = vmatmul.mubr.bf16.vlgmr.msra.gmra.mrb[0].mxu1 %v1970_v14  ;;  %v2032_v13 = vld [vmem:[%s3436_s2 + $0x160] ss:$8 sps:$4 sm:$0xff]  }
  0x41   :  { %602 = vmatpush1.bf16.msra.mxu0 %v2113_v22  ;;  %782 = vmatpush1.bf16.msra.mxu1 %v2113_v22 }
  0x42   :  { %603 = vmatprep.subr.bf16.mxu0 %v2236_v31  ;;  %783 = vmatprep.subr.bf16.mxu1 %v2236_v31 }
  0x43   :  { %1804 = vmatprep.mubr.msk.bf16.mxu0 %vm230_vm2, %v1973_v15  ;;  %1819 = vmatprep.mubr.msk.bf16.mxu1 %vm230_vm2, %v1976_v16 }
  0x45   :  { %604 = vmatpush1.bf16.msra.mxu0 %v2125_v29  ;;  %784 = vmatpush1.bf16.msra.mxu1 %v2125_v29 }
  0x46   :  { %605 = vmatprep.subr.bf16.mxu0 %v2273_v54  ;;  %785 = vmatprep.subr.bf16.mxu1 %v2273_v54 }
  0x48   :  { %283 = vmatmul.mubr.bf16.gmra.mrb[4].mxu0 %v1975_v17  ;;  %464 = vmatmul.mubr.bf16.gmra.mrb[4].mxu1 %v1978_v18 }
  0x49   :  { %606 = vmatpush1.bf16.msra.mxu0 %v2150_v44  ;;  %786 = vmatpush1.bf16.msra.mxu1 %v2150_v44 }
  0x4a   :  { %607 = vmatprep.subr.bf16.mxu0 %v2298_v4  ;;  %787 = vmatprep.subr.bf16.mxu1 %v2298_v4 }
  0x4b   :  { %1805 = vmatprep.mubr.msk.bf16.mxu0 %vm230_vm2, %v1979_v19  ;;  %1820 = vmatprep.mubr.msk.bf16.mxu1 %vm230_vm2, %v1982_v20 }
  0x4d   :  { %608 = vmatpush1.bf16.msra.mxu0 %v2162_v51  ;;  %788 = vmatpush1.bf16.msra.mxu1 %v2162_v51 }
  0x4e   :  { %609 = vmatprep.subr.bf16.mxu0 %v2311_v5  ;;  %789 = vmatprep.subr.bf16.mxu1 %v2311_v5 }
  0x50   :  { %293 = vmatmul.mubr.bf16.gmra.mrb[8].mxu0 %v1981_v21  ;;  %474 = vmatmul.mubr.bf16.gmra.mrb[8].mxu1 %v1984_v25 }
  0x51   :  { %610 = vmatpush1.bf16.msra.mxu0 %v2187_v1  ;;  %790 = vmatpush1.bf16.msra.mxu1 %v2187_v1 }
  0x52   :  { %611 = vmatprep.subr.bf16.mxu0 %v2317_v36  ;;  %791 = vmatprep.subr.bf16.mxu1 %v2317_v36 }
  0x53   :  { %1834 = vmatprep.mubr.msk.bf16.mxu0 %vm230_vm2, %v1987_v26  ;;  %1850 = vmatprep.mubr.msk.bf16.mxu1 %vm230_vm2, %v1990_v27 }
  0x55   :  { %612 = vmatpush1.bf16.msra.mxu0 %v2199_v8  ;;  %792 = vmatpush1.bf16.msra.mxu1 %v2199_v8 }
  0x56   :  { %613 = vmatprep.subr.bf16.mxu0 %v2323_v6  ;;  %793 = vmatprep.subr.bf16.mxu1 %v2323_v6 }
  0x59   :  { %614 = vmatpush1.bf16.msra.mxu0 %v2226_v24  ;;  %794 = vmatpush1.bf16.msra.mxu1 %v2226_v24 }
  0x5a   :  { %615 = vmatprep.subr.bf16.mxu0 %v2329_v7  ;;  %795 = vmatprep.subr.bf16.mxu1 %v2329_v7 }
  0x5d   :  { %616 = vmatpush1.bf16.msra.mxu0 %v2239_v32  ;;  %796 = vmatpush1.bf16.msra.mxu1 %v2239_v32 }
  0x5e   :  { %617 = vmatprep.subr.bf16.mxu0 %v2335_v9  ;;  %797 = vmatprep.subr.bf16.mxu1 %v2335_v9 }
  0x61   :  { %618 = vmatpush1.bf16.msra.mxu0 %v2265_v47  ;;  %798 = vmatpush1.bf16.msra.mxu1 %v2265_v47 }
  0x62   :  { %619 = vmatprep.subr.bf16.mxu0 %v2339_v10  ;;  %799 = vmatprep.subr.bf16.mxu1 %v2339_v10 }
  0x65   :  { %620 = vmatpush1.bf16.msra.mxu0 %v2276_v55  ;;  %800 = vmatpush1.bf16.msra.mxu1 %v2276_v55 }
  0x66   :  { %621 = vmatprep.subr.bf16.mxu0 %v2347_v11  ;;  %801 = vmatprep.subr.bf16.mxu1 %v2347_v11 }
  0x69   :  { %622 = vmatpush1.bf16.msra.mxu0 %v2288_v63  ;;  %802 = vmatpush1.bf16.msra.mxu1 %v2288_v63 }
  0x6a   :  { %623 = vmatprep.subr.bf16.mxu0 %v2353_v12  ;;  %803 = vmatprep.subr.bf16.mxu1 %v2353_v12 }
  0x6d   :  { %624 = vmatpush1.bf16.msra.mxu0 %v2293_v2  ;;  %804 = vmatpush1.bf16.msra.mxu1 %v2293_v2 }
  0x6e   :  { %961 = vmatprep.subr.bf16.mxu0 %v2222_v23  ;;  %1104 = vmatprep.subr.bf16.mxu1 %v2222_v23 }
  0x70   :  { %634 = vmatmul.mubr.bf16.vlgmr.msra.gmra.mrb[12].mxu0 %v1985_v28  ;;  %814 = vmatmul.mubr.bf16.vlgmr.msra.gmra.mrb[12].mxu1 %v1988_v30 }
  0x71   :  { %962 = vmatpush1.bf16.msra.mxu0 %v2113_v22  ;;  %1105 = vmatpush1.bf16.msra.mxu1 %v2113_v22 }
  0x72   :  { %963 = vmatprep.subr.bf16.mxu0 %v2236_v31  ;;  %1106 = vmatprep.subr.bf16.mxu1 %v2236_v31 }
  0x73   :  { %1835 = vmatprep.mubr.msk.bf16.mxu0 %vm230_vm2, %v1991_v33  ;;  %1851 = vmatprep.mubr.msk.bf16.mxu1 %vm230_vm2, %v1994_v34 }
  0x75   :  { %964 = vmatpush1.bf16.msra.mxu0 %v2125_v29  ;;  %1107 = vmatpush1.bf16.msra.mxu1 %v2125_v29 }
  0x76   :  { %965 = vmatprep.subr.bf16.mxu0 %v2273_v54  ;;  %1108 = vmatprep.subr.bf16.mxu1 %v2273_v54 }
  0x78   :  { %644 = vmatmul.mubr.bf16.gmra.mrb[16].mxu0 %v1993_v35  ;;  %824 = vmatmul.mubr.bf16.gmra.mrb[16].mxu1 %v1996_v37 }
  0x79   :  { %966 = vmatpush1.bf16.msra.mxu0 %v2150_v44  ;;  %1109 = vmatpush1.bf16.msra.mxu1 %v2150_v44 }
  0x7a   :  { %967 = vmatprep.subr.bf16.mxu0 %v2298_v4  ;;  %1110 = vmatprep.subr.bf16.mxu1 %v2298_v4 }
  0x7b   :  { %1836 = vmatprep.mubr.msk.bf16.mxu0 %vm230_vm2, %v1997_v38  ;;  %1852 = vmatprep.mubr.msk.bf16.mxu1 %vm230_vm2, %v2000_v39 }
  0x7d   :  { %968 = vmatpush1.bf16.msra.mxu0 %v2162_v51  ;;  %1111 = vmatpush1.bf16.msra.mxu1 %v2162_v51 }
  0x7e   :  { %969 = vmatprep.subr.bf16.mxu0 %v2311_v5  ;;  %1112 = vmatprep.subr.bf16.mxu1 %v2311_v5 }
  0x80   :  { %654 = vmatmul.mubr.bf16.gmra.mrb[20].mxu0 %v1999_v40  ;;  %834 = vmatmul.mubr.bf16.gmra.mrb[20].mxu1 %v2002_v41 }
  0x81   :  { %970 = vmatpush1.bf16.msra.mxu0 %v2187_v1  ;;  %1113 = vmatpush1.bf16.msra.mxu1 %v2187_v1 }
  0x82   :  { %971 = vmatprep.subr.bf16.mxu0 %v2317_v36  ;;  %1114 = vmatprep.subr.bf16.mxu1 %v2317_v36 }
  0x83   :  { %1866 = vmatprep.mubr.msk.bf16.mxu0 %vm230_vm2, %v2005_v42  ;;  %1882 = vmatprep.mubr.msk.bf16.mxu1 %vm230_vm2, %v2008_v43 }
  0x85   :  { %972 = vmatpush1.bf16.msra.mxu0 %v2199_v8  ;;  %1115 = vmatpush1.bf16.msra.mxu1 %v2199_v8 }
  0x86   :  { %973 = vmatprep.subr.bf16.mxu0 %v2323_v6  ;;  %1116 = vmatprep.subr.bf16.mxu1 %v2323_v6 }
  0x89   :  { %974 = vmatpush1.bf16.msra.mxu0 %v2226_v24  ;;  %1117 = vmatpush1.bf16.msra.mxu1 %v2226_v24 }
  0x8a   :  { %975 = vmatprep.subr.bf16.mxu0 %v2329_v7  ;;  %1118 = vmatprep.subr.bf16.mxu1 %v2329_v7 }
  0x8d   :  { %976 = vmatpush1.bf16.msra.mxu0 %v2239_v32  ;;  %1119 = vmatpush1.bf16.msra.mxu1 %v2239_v32 }
  0x8e   :  { %977 = vmatprep.subr.bf16.mxu0 %v2335_v9  ;;  %1120 = vmatprep.subr.bf16.mxu1 %v2335_v9 }
  0x91   :  { %978 = vmatpush1.bf16.msra.mxu0 %v2265_v47  ;;  %1121 = vmatpush1.bf16.msra.mxu1 %v2265_v47 }
  0x92   :  { %979 = vmatprep.subr.bf16.mxu0 %v2339_v10  ;;  %1122 = vmatprep.subr.bf16.mxu1 %v2339_v10 }
  0x95   :  { %980 = vmatpush1.bf16.msra.mxu0 %v2276_v55  ;;  %1123 = vmatpush1.bf16.msra.mxu1 %v2276_v55 }
  0x96   :  { %981 = vmatprep.subr.bf16.mxu0 %v2347_v11  ;;  %1124 = vmatprep.subr.bf16.mxu1 %v2347_v11 }
  0x99   :  { %982 = vmatpush1.bf16.msra.mxu0 %v2288_v63  ;;  %1125 = vmatpush1.bf16.msra.mxu1 %v2288_v63 }
  0x9a   :  { %983 = vmatprep.subr.bf16.mxu0 %v2353_v12  ;;  %1126 = vmatprep.subr.bf16.mxu1 %v2353_v12 }
  0x9d   :  { %984 = vmatpush1.bf16.msra.mxu0 %v2293_v2  ;;  %1127 = vmatpush1.bf16.msra.mxu1 %v2293_v2 }
  0x9e   :  { %1284 = vmatprep.subr.bf16.mxu0 %v2222_v23  ;;  %1464 = vmatprep.subr.bf16.mxu1 %v2222_v23 }
  0xa0   :  { %994 = vmatmul.mubr.bf16.vlgmr.msra.gmra.mrb[24].mxu0 %v2003_v45  ;;  %1137 = vmatmul.mubr.bf16.vlgmr.msra.gmra.mrb[24].mxu1 %v2006_v46 }
  0xa1   :  { %1285 = vmatpush1.bf16.msra.mxu0 %v2113_v22  ;;  %1465 = vmatpush1.bf16.msra.mxu1 %v2113_v22 }
  0xa2   :  { %1286 = vmatprep.subr.bf16.mxu0 %v2236_v31  ;;  %1466 = vmatprep.subr.bf16.mxu1 %v2236_v31 }
  0xa3   :  { %1883 = vmatprep.mubr.msk.bf16.mxu1 %vm230_vm2, %v2009_v48  ;;  %1867 = vmatprep.mubr.msk.bf16.mxu0 %vm230_vm2, %v2015_v49 }
  0xa5   :  { %1287 = vmatpush1.bf16.msra.mxu0 %v2125_v29  ;;  %1467 = vmatpush1.bf16.msra.mxu1 %v2125_v29 }
  0xa6   :  { %1288 = vmatprep.subr.bf16.mxu0 %v2273_v54  ;;  %1468 = vmatprep.subr.bf16.mxu1 %v2273_v54 }
  0xa8   :  { %1147 = vmatmul.mubr.bf16.gmra.mrb[28].mxu1 %v2011_v50  ;;  %1004 = vmatmul.mubr.bf16.gmra.mrb[28].mxu0 %v2017_v52 }
  0xa9   :  { %1289 = vmatpush1.bf16.msra.mxu0 %v2150_v44  ;;  %1469 = vmatpush1.bf16.msra.mxu1 %v2150_v44 }
  0xaa   :  { %1290 = vmatprep.subr.bf16.mxu0 %v2298_v4  ;;  %1470 = vmatprep.subr.bf16.mxu1 %v2298_v4 }
  0xab   :  { %1884 = vmatprep.mubr.msk.bf16.mxu1 %vm230_vm2, %v2012_v53  ;;  %1868 = vmatprep.mubr.msk.bf16.mxu0 %vm230_vm2, %v2018_v56 }
  0xad   :  { %1291 = vmatpush1.bf16.msra.mxu0 %v2162_v51  ;;  %1471 = vmatpush1.bf16.msra.mxu1 %v2162_v51 }
  0xae   :  { %1292 = vmatprep.subr.bf16.mxu0 %v2311_v5  ;;  %1472 = vmatprep.subr.bf16.mxu1 %v2311_v5 }
  0xb0   :  { %1157 = vmatmul.mubr.bf16.gmra.mrb[32].mxu1 %v2014_v57  ;;  %1014 = vmatmul.mubr.bf16.gmra.mrb[32].mxu0 %v2020_v58 }
  0xb1   :  { %1293 = vmatpush1.bf16.msra.mxu0 %v2187_v1  ;;  %1473 = vmatpush1.bf16.msra.mxu1 %v2187_v1 }
  0xb2   :  { %1294 = vmatprep.subr.bf16.mxu0 %v2317_v36  ;;  %1474 = vmatprep.subr.bf16.mxu1 %v2317_v36 }
  0xb3   :  { %1898 = vmatprep.mubr.msk.bf16.mxu0 %vm230_vm2, %v2023_v59  ;;  %1914 = vmatprep.mubr.msk.bf16.mxu1 %vm230_vm2, %v2026_v60 }
  0xb5   :  { %1295 = vmatpush1.bf16.msra.mxu0 %v2199_v8  ;;  %1475 = vmatpush1.bf16.msra.mxu1 %v2199_v8 }
  0xb6   :  { %1296 = vmatprep.subr.bf16.mxu0 %v2323_v6  ;;  %1476 = vmatprep.subr.bf16.mxu1 %v2323_v6 }
  0xb9   :  { %1297 = vmatpush1.bf16.msra.mxu0 %v2226_v24  ;;  %1477 = vmatpush1.bf16.msra.mxu1 %v2226_v24 }
  0xba   :  { %1298 = vmatprep.subr.bf16.mxu0 %v2329_v7  ;;  %1478 = vmatprep.subr.bf16.mxu1 %v2329_v7 }
  0xbd   :  { %1299 = vmatpush1.bf16.msra.mxu0 %v2239_v32  ;;  %1479 = vmatpush1.bf16.msra.mxu1 %v2239_v32 }
  0xbe   :  { %1300 = vmatprep.subr.bf16.mxu0 %v2335_v9  ;;  %1480 = vmatprep.subr.bf16.mxu1 %v2335_v9 }
  0xc1   :  { %1301 = vmatpush1.bf16.msra.mxu0 %v2265_v47  ;;  %1481 = vmatpush1.bf16.msra.mxu1 %v2265_v47 }
  0xc2   :  { %1302 = vmatprep.subr.bf16.mxu0 %v2339_v10  ;;  %1482 = vmatprep.subr.bf16.mxu1 %v2339_v10 }
  0xc5   :  { %1303 = vmatpush1.bf16.msra.mxu0 %v2276_v55  ;;  %1483 = vmatpush1.bf16.msra.mxu1 %v2276_v55 }
  0xc6   :  { %1304 = vmatprep.subr.bf16.mxu0 %v2347_v11  ;;  %1484 = vmatprep.subr.bf16.mxu1 %v2347_v11 }
  0xc9   :  { %1305 = vmatpush1.bf16.msra.mxu0 %v2288_v63  ;;  %1485 = vmatpush1.bf16.msra.mxu1 %v2288_v63 }
  0xca   :  { %1306 = vmatprep.subr.bf16.mxu0 %v2353_v12  ;;  %1486 = vmatprep.subr.bf16.mxu1 %v2353_v12 }
  0xcd   :  { %1307 = vmatpush1.bf16.msra.mxu0 %v2293_v2  ;;  %1487 = vmatpush1.bf16.msra.mxu1 %v2293_v2 }
  0xce   :  { %1644 = vmatprep.subr.bf16.mxu0 %v2222_v23  ;;  %1934 = vmatprep.subr.bf16.mxu1 %v2222_v23  ;;  %v2029_v23 = vld [vmem:[%s3436_s2 + $0x130] ss:$8 sps:$4 sm:$0xff]  }
  0xd0   :  { %1317 = vmatmul.mubr.bf16.vlgmr.msra.gmra.mrb[36].mxu0 %v2021_v61  ;;  %1497 = vmatmul.mubr.bf16.vlgmr.msra.gmra.mrb[36].mxu1 %v2024_v62 }
  0xd1   :  { %1645 = vmatpush1.bf16.msra.mxu0 %v2113_v22  ;;  %1946 = vmatpush1.bf16.msra.mxu1 %v2113_v22  ;;  %v2033_v22 = vld [vmem:[%s3436_s2 + $0x144] ss:$8 sps:$4 sm:$0xff]  }
  0xd2   :  { %1646 = vmatprep.subr.bf16.mxu0 %v2236_v31  ;;  %1935 = vmatprep.subr.bf16.mxu1 %v2236_v31  ;;  %v2036_v31 = vld [vmem:[%s3436_s2 + $0x174] ss:$8 sps:$4 sm:$0xff]  }
  0xd3   :  { %1899 = vmatprep.mubr.msk.bf16.mxu0 %vm230_vm2, %v2027_v0  ;;  %1915 = vmatprep.mubr.msk.bf16.mxu1 %vm230_vm2, %v2030_v3 }
  0xd5   :  { %1647 = vmatpush1.bf16.msra.mxu0 %v2125_v29  ;;  %1947 = vmatpush1.bf16.msra.mxu1 %v2125_v29  ;;  %v2035_v29 = vld [vmem:[%s3436_s2 + $0x140] ss:$8 sps:$4 sm:$0xff]  }
  0xd6   :  { %1648 = vmatprep.subr.bf16.mxu0 %v2273_v54  ;;  %1936 = vmatprep.subr.bf16.mxu1 %v2273_v54  ;;  %v2038_v54 = vld [vmem:[%s3436_s2 + $0x170] ss:$8 sps:$4 sm:$0xff]  }
  0xd8   :  { %1327 = vmatmul.mubr.bf16.gmra.mrb[40].mxu0 %v2029_v23  ;;  %1507 = vmatmul.mubr.bf16.gmra.mrb[40].mxu1 %v2032_v13 }
  0xd9   :  { %1649 = vmatpush1.bf16.msra.mxu0 %v2150_v44  ;;  %1948 = vmatpush1.bf16.msra.mxu1 %v2150_v44  ;;  %v2041_v44 = vld [vmem:[%s3436_s2 + $0x184] ss:$8 sps:$4 sm:$0xff]  }
  0xda   :  { %1650 = vmatprep.subr.bf16.mxu0 %v2298_v4  ;;  %1937 = vmatprep.subr.bf16.mxu1 %v2298_v4  ;;  %v2044_v4 = vld [vmem:[%s3436_s2 + $0x194] ss:$8 sps:$4 sm:$0xff]  }
  0xdb   :  { %1900 = vmatprep.mubr.msk.bf16.mxu0 %vm230_vm2, %v2033_v22  ;;  %1916 = vmatprep.mubr.msk.bf16.mxu1 %vm230_vm2, %v2036_v31 }
  0xdd   :  { %1651 = vmatpush1.bf16.msra.mxu0 %v2162_v51  ;;  %1949 = vmatpush1.bf16.msra.mxu1 %v2162_v51  ;;  %v2039_v51 = vld [vmem:[%s3436_s2 + $0x180] ss:$8 sps:$4 sm:$0xff]  }
  0xde   :  { %1652 = vmatprep.subr.bf16.mxu0 %v2311_v5  ;;  %1938 = vmatprep.subr.bf16.mxu1 %v2311_v5 }
  0xe0   :  { %1337 = vmatmul.mubr.bf16.gmra.mrb[44].mxu0 %v2035_v29  ;;  %1517 = vmatmul.mubr.bf16.gmra.mrb[44].mxu1 %v2038_v54 }
  0xe1   :  { %1653 = vmatpush1.bf16.msra.mxu0 %v2187_v1  ;;  %1950 = vmatpush1.bf16.msra.mxu1 %v2187_v1  ;;  %v2042_v1 = vld [vmem:[%s3436_s2 + $0x190] ss:$8 sps:$4 sm:$0xff]  }
  0xe2   :  { %1654 = vmatprep.subr.bf16.mxu0 %v2317_v36  ;;  %1939 = vmatprep.subr.bf16.mxu1 %v2317_v36 }
  0xe3   :  { %1930 = vmatprep.mubr.msk.bf16.mxu0 %vm230_vm2, %v2041_v44  ;;  %1931 = vmatprep.mubr.msk.bf16.mxu1 %vm230_vm2, %v2044_v4 }
  0xe5   :  { %1655 = vmatpush1.bf16.msra.mxu0 %v2199_v8  ;;  %1951 = vmatpush1.bf16.msra.mxu1 %v2199_v8  ;;  %v2045_v8 = vld [vmem:[%s3436_s2 + $0x1a4] ss:$8 sps:$4 sm:$0xff]  }
  0xe6   :  { %1656 = vmatprep.subr.bf16.mxu0 %v2323_v6  ;;  %1940 = vmatprep.subr.bf16.mxu1 %v2323_v6 }
  0xe9   :  { %1657 = vmatpush1.bf16.msra.mxu0 %v2226_v24  ;;  %1952 = vmatpush1.bf16.msra.mxu1 %v2226_v24  ;;  %v2047_v24 = vld [vmem:[%s3436_s2 + $0x1a0] ss:$8 sps:$4 sm:$0xff]   ;;  %s2051_s2 = smov 13  }
  0xea   :  { %1658 = vmatprep.subr.bf16.mxu0 %v2329_v7  ;;  %1941 = vmatprep.subr.bf16.mxu1 %v2329_v7 }
  0xed   :  { %1659 = vmatpush1.bf16.msra.mxu0 %v2239_v32  ;;  %1953 = vmatpush1.bf16.msra.mxu1 %v2239_v32 }
  0xee   :  { %1660 = vmatprep.subr.bf16.mxu0 %v2335_v9  ;;  %1942 = vmatprep.subr.bf16.mxu1 %v2335_v9 }
  0xf1   :  { %1661 = vmatpush1.bf16.msra.mxu0 %v2265_v47  ;;  %1954 = vmatpush1.bf16.msra.mxu1 %v2265_v47 }
  0xf2   :  { %1662 = vmatprep.subr.bf16.mxu0 %v2339_v10  ;;  %1943 = vmatprep.subr.bf16.mxu1 %v2339_v10 }
  0xf5   :  { %1663 = vmatpush1.bf16.msra.mxu0 %v2276_v55  ;;  %1955 = vmatpush1.bf16.msra.mxu1 %v2276_v55 }
  0xf6   :  { %1664 = vmatprep.subr.bf16.mxu0 %v2347_v11  ;;  %1944 = vmatprep.subr.bf16.mxu1 %v2347_v11 }
  0xf9   :  { %1665 = vmatpush1.bf16.msra.mxu0 %v2288_v63  ;;  %1956 = vmatpush1.bf16.msra.mxu1 %v2288_v63 }
  0xfa   :  { %1666 = vmatprep.subr.bf16.mxu0 %v2353_v12  ;;  %1945 = vmatprep.subr.bf16.mxu1 %v2353_v12 }
  0xfd   :  { %1667 = vmatpush1.bf16.msra.mxu0 %v2293_v2  ;;  %1957 = vmatpush1.bf16.msra.mxu1 %v2293_v2 }
 0x100   :  { %1677 = vmatmul.mubr.bf16.vlgmr.msra.gmra.mrb[48].mxu0 %v2039_v51  ;;  %1687 = vmatmul.mubr.bf16.vlgmr.msra.gmra.mrb[48].mxu1 %v2042_v1 }
 0x101   :  { %1932 = vmatprep.mubr.msk.bf16.mxu1 %vm230_vm2, %v2045_v8 }
 0x108   :  { %1697 = vmatmul.mubr.bf16.gmra.mrb[52].mxu1 %v2047_v24 }
 0x113   :  { %v274_v32 = vpop.f32.mrb[0].mxu0  ;;  %v455_v47 = vpop.f32.mrb[0].mxu1 }
 0x114   :  { %v457_v55 = vpop.f32.mrb[1].mxu1  ;;  %303 = vrot.lane.b32.xlu0 %v274_v32, %s2049_s23  ;;  %v276_v63 = vpop.f32.mrb[1].mxu0 }
 0x115   :  { %v278_v2 = vpop.f32.mrb[2].mxu0  ;;  %v459_v5 = vpop.f32.mrb[2].mxu1 }
 0x116   :  { %486 = vrot.lane.b32.xlu1 %v459_v5, %s2050_s24  ;;  %v280_v36 = vpop.f32.mrb[3].mxu0  ;;  %v461_v6 = vpop.f32.mrb[3].mxu1 }
 0x118   :  { %484 = vrot.lane.b32.xlu0 %v455_v47, %s2050_s24 }
 0x11a   :  { %317 = vrot.lane.b32.xlu1 %v280_v36, %s2049_s23  ;;  %v327_v36 = vlaneseq }
 0x11b   :  { %v284_v7 = vpop.f32.mrb[4].mxu0  ;;  %v465_v9 = vpop.f32.mrb[4].mxu1 }
 0x11c   :  { %315 = vrot.lane.b32.xlu0 %v276_v63, %s2049_s23  ;;  %v286_v10 = vpop.f32.mrb[5].mxu0  ;;  %v467_v11 = vpop.f32.mrb[5].mxu1 }
 0x11d   :  { %v288_v12 = vpop.f32.mrb[6].mxu0  ;;  %v469_v14 = vpop.f32.mrb[6].mxu1 }
 0x11e   :  { %498 = vrot.lane.b32.xlu1 %v461_v6, %s2050_s24  ;;  %v290_v15 = vpop.f32.mrb[7].mxu0  ;;  %v471_v16 = vpop.f32.mrb[7].mxu1 }
 0x120   :  { %496 = vrot.lane.b32.xlu0 %v457_v55, %s2050_s24 }
 0x122   :  { %307 = vrot.lane.b32.xlu1 %v284_v7, %s2049_s23 }
 0x123   :  { %v294_v17 = vpop.f32.mrb[8].mxu0  ;;  %v475_v18 = vpop.f32.mrb[8].mxu1 }
 0x124   :  { %305 = vrot.lane.b32.xlu0 %v278_v2, %s2049_s23  ;;  %v296_v19 = vpop.f32.mrb[9].mxu0  ;;  %v477_v20 = vpop.f32.mrb[9].mxu1 }
 0x125   :  { %v298_v21 = vpop.f32.mrb[10].mxu0  ;;  %v479_v25 = vpop.f32.mrb[10].mxu1 }
 0x126   :  { %309 = vrot.lane.b32.xlu1 %v288_v12, %s2049_s23  ;;  %v300_v26 = vpop.f32.mrb[11].mxu0  ;;  %v481_v27 = vpop.f32.mrb[11].mxu1  ;;  %v345_v12 = vshrl.u32 %v327_v36, 7 }
 0x128   :  { %488 = vrot.lane.b32.xlu0 %v465_v9, %s2050_s24 }
 0x12a   :  { %490 = vrot.lane.b32.xlu1 %v469_v14, %s2050_s24 }
 0x12c   :  { %319 = vrot.lane.b32.xlu0 %v286_v10, %s2049_s23 }
 0x12e   :  { %321 = vrot.lane.b32.xlu1 %v290_v15, %s2049_s23 }
 0x130   :  { %500 = vrot.lane.b32.xlu0 %v467_v11, %s2050_s24  ;;  %v2817_v11 = vand.u32 127, %v327_v36 }
 0x132   :  { %502 = vrot.lane.b32.xlu1 %v471_v16, %s2050_s24  ;;  %vm329_vm3 = vcmp.lt.s32.totalorder %v2817_v11, 15  ;;  %v342_v16 = vld [vmem:[%s3437_s0] ss:$8 sm:$0x3]  ;;  %vm508_vm4 = vcmp.lt.s32.totalorder %v2817_v11, 14  ;;  %vm688_vm5 = vcmp.lt.s32.totalorder %v2817_v11, 13 }
 0x133   :  { %vm868_vm6 = vcmp.lt.s32.totalorder %v2817_v11, 1  ;;  %vm1191_vm7 = vcmp.lt.s32.totalorder %v2817_v11, 127  ;;  %vm1371_vm8 = vcmp.lt.s32.totalorder %v2817_v11, 115  ;;  %vm1551_vm9 = vcmp.lt.s32.totalorder %v2817_v11, 114 }
 0x134   :  { %311 = vrot.lane.b32.xlu0 %v294_v17, %s2049_s23  ;;  %v2824_v17 = vsub.s32 0, %v345_v12  ;;  %vm1731_vm10 = vcmp.lt.s32.totalorder %v2817_v11, 113 }
 0x136   :  { %313 = vrot.lane.b32.xlu1 %v298_v21, %s2049_s23 }
 0x138   :  { %492 = vrot.lane.b32.xlu0 %v475_v18, %s2050_s24  ;;  %v2826_v18 = vsub.s32 1, %v345_v12 }
 0x13a   :  { %494 = vrot.lane.b32.xlu1 %v479_v25, %s2050_s24  ;;  %v1821_v25 = vld [vmem:[%s3437_s0 + $0x1] ss:$8 sm:$0x3] }
 0x13c   :  { %323 = vrot.lane.b32.xlu0 %v296_v19, %s2049_s23 }
 0x13e   :  { %325 = vrot.lane.b32.xlu1 %v300_v26, %s2049_s23  ;;  %v2837_v26 = vrot.slane %v342_v16, %v2824_v17 }
 0x140   :  { %504 = vrot.lane.b32.xlu0 %v477_v20, %s2050_s24 }
 0x142   :  { %506 = vrot.lane.b32.xlu1 %v481_v27, %s2050_s24  ;;  %v2840_v27 = vrot.slane %v342_v16, %v2826_v18 }
 0x143   :  { %v635_v28 = vpop.f32.mrb[12].mxu0  ;;  %v815_v30 = vpop.f32.mrb[12].mxu1 }
 0x144   :  { %664 = vrot.lane.b32.xlu0 %v635_v28, %s2051_s2  ;;  %v637_v33 = vpop.f32.mrb[13].mxu0  ;;  %v817_v34 = vpop.f32.mrb[13].mxu1 }
 0x145   :  { %v639_v35 = vpop.f32.mrb[14].mxu0  ;;  %v819_v37 = vpop.f32.mrb[14].mxu1 }
 0x146   :  { %666 = vrot.lane.b32.xlu1 %v639_v35, %s2051_s2  ;;  %v641_v38 = vpop.f32.mrb[15].mxu0  ;;  %v821_v39 = vpop.f32.mrb[15].mxu1  ;;  %v2850_v35 = vrot.slane %v1821_v25, %v2826_v18 }
 0x148   :  { %844 = vrot.lane.b32.xlu0 %v815_v30, %s2052_s25 }
 0x14a   :  { %846 = vrot.lane.b32.xlu1 %v819_v37, %s2052_s25 }
 0x14b   :  { %v645_v40 = vpop.f32.mrb[16].mxu0  ;;  %v825_v41 = vpop.f32.mrb[16].mxu1 }
 0x14c   :  { %676 = vrot.lane.b32.xlu0 %v637_v33, %s2051_s2  ;;  %v647_v42 = vpop.f32.mrb[17].mxu0  ;;  %v827_v43 = vpop.f32.mrb[17].mxu1 }
 0x14d   :  { %v649_v45 = vpop.f32.mrb[18].mxu0  ;;  %v829_v46 = vpop.f32.mrb[18].mxu1 }
 0x14e   :  { %678 = vrot.lane.b32.xlu1 %v641_v38, %s2051_s2  ;;  %v651_v48 = vpop.f32.mrb[19].mxu0  ;;  %v831_v49 = vpop.f32.mrb[19].mxu1 }
 0x150   :  { %856 = vrot.lane.b32.xlu0 %v817_v34, %s2052_s25  ;;  %v2847_v34 = vrot.slane %v1821_v25, %v2824_v17 }
 0x152   :  { %858 = vrot.lane.b32.xlu1 %v821_v39, %s2052_s25 }
 0x153   :  { %v655_v50 = vpop.f32.mrb[20].mxu0  ;;  %v835_v52 = vpop.f32.mrb[20].mxu1 }
 0x154   :  { %668 = vrot.lane.b32.xlu0 %v645_v40, %s2051_s2  ;;  %v657_v53 = vpop.f32.mrb[21].mxu0  ;;  %v837_v56 = vpop.f32.mrb[21].mxu1 }
 0x155   :  { %v659_v57 = vpop.f32.mrb[22].mxu0  ;;  %v839_v58 = vpop.f32.mrb[22].mxu1 }
 0x156   :  { %670 = vrot.lane.b32.xlu1 %v649_v45, %s2051_s2  ;;  %v661_v59 = vpop.f32.mrb[23].mxu0  ;;  %v841_v60 = vpop.f32.mrb[23].mxu1 }
 0x158   :  { %848 = vrot.lane.b32.xlu0 %v825_v41, %s2052_s25 }
 0x15a   :  { %850 = vrot.lane.b32.xlu1 %v829_v46, %s2052_s25 }
 0x15c   :  { %680 = vrot.lane.b32.xlu0 %v647_v42, %s2051_s2 }
 0x15e   :  { %682 = vrot.lane.b32.xlu1 %v651_v48, %s2051_s2 }
 0x160   :  { %860 = vrot.lane.b32.xlu0 %v827_v43, %s2052_s25 }
 0x162   :  { %862 = vrot.lane.b32.xlu1 %v831_v49, %s2052_s25 }
 0x164   :  { %672 = vrot.lane.b32.xlu0 %v655_v50, %s2051_s2 }
 0x166   :  { %674 = vrot.lane.b32.xlu1 %v659_v57, %s2051_s2 }
 0x168   :  { %852 = vrot.lane.b32.xlu0 %v835_v52, %s2052_s25 }
 0x16a   :  { %854 = vrot.lane.b32.xlu1 %v839_v58, %s2052_s25 }
 0x16c   :  { %684 = vrot.lane.b32.xlu0 %v657_v53, %s2051_s2 }
 0x16e   :  { %686 = vrot.lane.b32.xlu1 %v661_v59, %s2051_s2 }
 0x170   :  { %864 = vrot.lane.b32.xlu0 %v837_v56, %s2052_s25 }
 0x172   :  { %866 = vrot.lane.b32.xlu1 %v841_v60, %s2052_s25 }
 0x173   :  { %v2782_v61 = vpop.f32.mrb[24].mxu0  ;;  %v1138_v62 = vpop.f32.mrb[24].mxu1 }
 0x174   :  { %v1140_v0 = vpop.f32.mrb[25].mxu1  ;;  %1167 = vrot.lane.b32.xlu0 %v1138_v62, %s2053_s26  ;;  %v2785_v3 = vpop.f32.mrb[25].mxu0 }
 0x175   :  { %v2787_v23 = vpop.f32.mrb[26].mxu0  ;;  %v1142_v13 = vpop.f32.mrb[26].mxu1 }
 0x176   :  { %1169 = vrot.lane.b32.xlu1 %v1142_v13, %s2053_s26  ;;  %v2790_v22 = vpop.f32.mrb[27].mxu0  ;;  %v1144_v31 = vpop.f32.mrb[27].mxu1 }
 0x178   :  { %1179 = vrot.lane.b32.xlu0 %v1140_v0, %s2053_s26 }
 0x17a   :  { %1181 = vrot.lane.b32.xlu1 %v1144_v31, %s2053_s26 }
 0x17b   :  { %v1148_v29 = vpop.f32.mrb[28].mxu1  ;;  %v2794_v54 = vpop.f32.mrb[28].mxu0 }
 0x17c   :  { %v1150_v44 = vpop.f32.mrb[29].mxu1  ;;  %1171 = vrot.lane.b32.xlu0 %v1148_v29, %s2053_s26  ;;  %v2797_v4 = vpop.f32.mrb[29].mxu0 }
 0x17d   :  { %v1152_v51 = vpop.f32.mrb[30].mxu1  ;;  %v2799_v1 = vpop.f32.mrb[30].mxu0 }
 0x17e   :  { %1173 = vrot.lane.b32.xlu1 %v1152_v51, %s2053_s26  ;;  %v1154_v8 = vpop.f32.mrb[31].mxu1  ;;  %v2802_v24 = vpop.f32.mrb[31].mxu0 }
 0x180   :  { %1183 = vrot.lane.b32.xlu0 %v1150_v44, %s2053_s26 }
 0x182   :  { %1185 = vrot.lane.b32.xlu1 %v1154_v8, %s2053_s26 }
 0x183   :  { %v1158_v32 = vpop.f32.mrb[32].mxu1  ;;  %v2806_v47 = vpop.f32.mrb[32].mxu0 }
 0x184   :  { %v1160_v55 = vpop.f32.mrb[33].mxu1  ;;  %1175 = vrot.lane.b32.xlu0 %v1158_v32, %s2053_s26  ;;  %v2809_v63 = vpop.f32.mrb[33].mxu0 }
 0x185   :  { %v1162_v2 = vpop.f32.mrb[34].mxu1  ;;  %v2811_v5 = vpop.f32.mrb[34].mxu0 }
 0x186   :  { %v304_v6 = vpop.permute.xlu0 %303  ;;  %1177 = vrot.lane.b32.xlu1 %v1162_v2, %s2053_s26  ;;  %v1164_v7 = vpop.f32.mrb[35].mxu1 }
 0x187   :  { %v2814_v9 = vpop.f32.mrb[35].mxu0 }
 0x188   :  { %v487_v10 = vpop.permute.xlu1 %486  ;;  %1187 = vrot.lane.b32.xlu0 %v1160_v55, %s2053_s26 }
 0x18a   :  { %v485_v14 = vpop.permute.xlu0 %484  ;;  %1189 = vrot.lane.b32.xlu1 %v1164_v7, %s2053_s26 }
 0x18c   :  { %v318_v15 = vpop.permute.xlu1 %317 }
 0x18e   :  { %v316_v19 = vpop.permute.xlu0 %315 }
 0x18f   :  { %v330_v20 = vsel %vm329_vm3, %v304_v6, %v316_v19  ;;  %v336_v21 = vsel %vm329_vm3, %v316_v19, %v304_v6 }
 0x190   :  { %v499_v28 = vpop.permute.xlu1 %498  ;;  %v354_v40 = vmul.f32 %v2837_v26, %v336_v21  ;;  %v355_v41 = vmul.f32 %v2840_v27, %v330_v20 }
 0x191   :  { %v510_v30 = vsel %vm508_vm4, %v487_v10, %v499_v28  ;;  %v516_v33 = vsel %vm508_vm4, %v499_v28, %v487_v10 }
 0x192   :  { %v497_v37 = vpop.permute.xlu0 %496  ;;  %v536_v53 = vmul.f32 %v2847_v34, %v516_v33  ;;  %v537_v56 = vmul.f32 %v2850_v35, %v510_v30 }
 0x193   :  { %v509_v38 = vsel %vm508_vm4, %v485_v14, %v497_v37  ;;  %v515_v39 = vsel %vm508_vm4, %v497_v37, %v485_v14 }
 0x194   :  { %v534_v42 = vmul.f32 %v2847_v34, %v515_v39  ;;  %v535_v43 = vmul.f32 %v2850_v35, %v509_v38  ;;  %v308_v45 = vpop.permute.xlu1 %307 }
 0x196   :  { %v2860_v46 = vadd.f32 %v534_v42, %v354_v40  ;;  %v2862_v48 = vadd.f32 %v535_v43, %v355_v41  ;;  %v306_v49 = vpop.permute.xlu0 %305 }
 0x197   :  { %v331_v50 = vsel %vm329_vm3, %v306_v49, %v318_v15  ;;  %v337_v52 = vsel %vm329_vm3, %v318_v15, %v306_v49 }
 0x198   :  { %v356_v57 = vmul.f32 %v2837_v26, %v337_v52  ;;  %v357_v58 = vmul.f32 %v2840_v27, %v331_v50  ;;  %v310_v59 = vpop.permute.xlu1 %309 }
 0x19a   :  { %v2872_v60 = vadd.f32 %v536_v53, %v356_v57  ;;  %v2874_v62 = vadd.f32 %v537_v56, %v357_v58  ;;  %v489_v0 = vpop.permute.xlu0 %488 }
 0x19c   :  { %v491_v13 = vpop.permute.xlu1 %490 }
 0x19e   :  { %v320_v31 = vpop.permute.xlu0 %319 }
 0x19f   :  { %v332_v29 = vsel %vm329_vm3, %v308_v45, %v320_v31  ;;  %v338_v44 = vsel %vm329_vm3, %v320_v31, %v308_v45 }
 0x1a0   :  { %v322_v51 = vpop.permute.xlu1 %321  ;;  %v358_v55 = vmul.f32 %v2837_v26, %v338_v44  ;;  %v359_v2 = vmul.f32 %v2840_v27, %v332_v29 }
 0x1a1   :  { %v333_v8 = vsel %vm329_vm3, %v310_v59, %v322_v51  ;;  %v339_v32 = vsel %vm329_vm3, %v322_v51, %v310_v59 }
 0x1a2   :  { %v501_v36 = vpop.permute.xlu0 %500  ;;  %v360_v14 = vmul.f32 %v2837_v26, %v339_v32  ;;  %v361_v15 = vmul.f32 %v2840_v27, %v333_v8 }
 0x1a3   :  { %v511_v6 = vsel %vm508_vm4, %v489_v0, %v501_v36  ;;  %v517_v7 = vsel %vm508_vm4, %v501_v36, %v489_v0  ;;  %v1318_v10 = vpop.f32.mrb[36].mxu0  ;;  %v1498_v12 = vpop.f32.mrb[36].mxu1 }
 0x1a4   :  { %v538_v16 = vmul.f32 %v2847_v34, %v517_v7  ;;  %v539_v19 = vmul.f32 %v2850_v35, %v511_v6  ;;  %v503_v20 = vpop.permute.xlu1 %502  ;;  %1347 = vrot.lane.b32.xlu0 %v1318_v10, %s2054_s30  ;;  %v1320_v21 = vpop.f32.mrb[37].mxu0 }
 0x1a5   :  { %v512_v25 = vsel %vm508_vm4, %v491_v13, %v503_v20  ;;  %v518_v28 = vsel %vm508_vm4, %v503_v20, %v491_v13  ;;  %v1322_v30 = vpop.f32.mrb[38].mxu0  ;;  %v1500_v33 = vpop.f32.mrb[37].mxu1 }
 0x1a6   :  { %v2899_v37 = vadd.f32 %v538_v16, %v358_v55  ;;  %v2901_v38 = vadd.f32 %v539_v19, %v359_v2  ;;  %v540_v39 = vmul.f32 %v2847_v34, %v518_v28  ;;  %v541_v40 = vmul.f32 %v2850_v35, %v512_v25  ;;  %v1502_v41 = vpop.f32.mrb[38].mxu1  ;;  %v312_v42 = vpop.permute.xlu0 %311  ;;  %1349 = vrot.lane.b32.xlu1 %v1322_v30, %s2054_s30 }
 0x1a7   :  { %v1324_v43 = vpop.f32.mrb[39].mxu0  ;;  %v1504_v45 = vpop.f32.mrb[39].mxu1 }
 0x1a8   :  { %v2906_v49 = vadd.f32 %v540_v39, %v360_v14  ;;  %v2908_v50 = vadd.f32 %v541_v40, %v361_v15  ;;  %v314_v52 = vpop.permute.xlu1 %313  ;;  %1527 = vrot.lane.b32.xlu0 %v1498_v12, %s2055_s4 }
 0x1aa   :  { %v493_v53 = vpop.permute.xlu0 %492  ;;  %1529 = vrot.lane.b32.xlu1 %v1502_v41, %s2055_s4 }
 0x1ab   :  { %v1328_v56 = vpop.f32.mrb[40].mxu0  ;;  %v1508_v57 = vpop.f32.mrb[40].mxu1 }
 0x1ac   :  { %v495_v58 = vpop.permute.xlu1 %494  ;;  %1359 = vrot.lane.b32.xlu0 %v1320_v21, %s2054_s30  ;;  %v1330_v59 = vpop.f32.mrb[41].mxu0 }
 0x1ad   :  { %v1332_v0 = vpop.f32.mrb[42].mxu0  ;;  %v1510_v13 = vpop.f32.mrb[41].mxu1 }
 0x1ae   :  { %v324_v31 = vpop.permute.xlu0 %323  ;;  %1361 = vrot.lane.b32.xlu1 %v1324_v43, %s2054_s30  ;;  %v1334_v29 = vpop.f32.mrb[43].mxu0 }
 0x1af   :  { %v334_v44 = vsel %vm329_vm3, %v312_v42, %v324_v31  ;;  %v340_v51 = vsel %vm329_vm3, %v324_v31, %v312_v42  ;;  %v1512_v8 = vpop.f32.mrb[42].mxu1 }
 0x1b0   :  { %v326_v32 = vpop.permute.xlu1 %325  ;;  %1539 = vrot.lane.b32.xlu0 %v1500_v33, %s2055_s4  ;;  %v2919_v55 = vpop.f32.mrb[43].mxu1  ;;  %v362_v15 = vmul.f32 %v2837_v26, %v340_v51  ;;  %v363_v16 = vmul.f32 %v2840_v27, %v334_v44 }
 0x1b1   :  { %v335_v2 = vsel %vm329_vm3, %v314_v52, %v326_v32  ;;  %v341_v36 = vsel %vm329_vm3, %v326_v32, %v314_v52 }
 0x1b2   :  { %v505_v6 = vpop.permute.xlu0 %504  ;;  %1541 = vrot.lane.b32.xlu1 %v1504_v45, %s2055_s4  ;;  %v364_v28 = vmul.f32 %v2837_v26, %v341_v36  ;;  %v365_v30 = vmul.f32 %v2840_v27, %v335_v2  ;;  %v1869_v2 = vld [vmem:[%s3437_s0 + $0x4] ss:$8 sm:$0x3] }
 0x1b3   :  { %v513_v7 = vsel %vm508_vm4, %v493_v53, %v505_v6  ;;  %v519_v10 = vsel %vm508_vm4, %v505_v6, %v493_v53  ;;  %v2930_v12 = vpop.f32.mrb[44].mxu0  ;;  %v2932_v14 = vpop.f32.mrb[44].mxu1 }
 0x1b4   :  { %v542_v19 = vmul.f32 %v2847_v34, %v519_v10  ;;  %v543_v20 = vmul.f32 %v2850_v35, %v513_v7  ;;  %v507_v21 = vpop.permute.xlu1 %506  ;;  %1351 = vrot.lane.b32.xlu0 %v1328_v56, %s2054_s30  ;;  %v2939_v25 = vpop.f32.mrb[45].mxu0 }
 0x1b5   :  { %v514_v33 = vsel %vm508_vm4, %v495_v58, %v507_v21  ;;  %v520_v39 = vsel %vm508_vm4, %v507_v21, %v495_v58  ;;  %v1342_v40 = vpop.f32.mrb[46].mxu0  ;;  %v2947_v41 = vpop.f32.mrb[45].mxu1 }
 0x1b6   :  { %v2949_v42 = vadd.f32 %v542_v19, %v362_v15  ;;  %v2951_v43 = vadd.f32 %v543_v20, %v363_v16  ;;  %v544_v45 = vmul.f32 %v2847_v34, %v520_v39  ;;  %v545_v52 = vmul.f32 %v2850_v35, %v514_v33  ;;  %v665_v26 = vpop.permute.xlu0 %664  ;;  %1353 = vrot.lane.b32.xlu1 %v1332_v0, %s2054_s30  ;;  %v2956_v27 = vpop.f32.mrb[47].mxu0  ;;  %v1837_v34 = vld [vmem:[%s3437_s0 + $0x2] ss:$8 sm:$0x3] }
 0x1b7   :  { %v2958_v53 = vpop.f32.mrb[46].mxu1  ;;  %v2974_v51 = vrot.slane %v1837_v34, %v2824_v17  ;;  %v2977_v32 = vrot.slane %v1837_v34, %v2826_v18  ;;  %v3001_v16 = vrot.slane %v1869_v2, %v2824_v17  ;;  %v3004_v19 = vrot.slane %v1869_v2, %v2826_v18 }
 0x1b8   :  { %v2960_v56 = vadd.f32 %v544_v45, %v364_v28  ;;  %v2962_v58 = vadd.f32 %v545_v52, %v365_v30  ;;  %v667_v31 = vpop.permute.xlu1 %666  ;;  %1531 = vrot.lane.b32.xlu0 %v1508_v57, %s2055_s4  ;;  %v2965_v44 = vpop.f32.mrb[47].mxu1  ;;  %v1853_v57 = vld [vmem:[%s3437_s0 + $0x3] ss:$8 sm:$0x3] }
 0x1b9   :  { %v2995_v15 = vrot.slane %v1853_v57, %v2824_v17 }
 0x1ba   :  { %v845_v35 = vpop.permute.xlu0 %844  ;;  %1533 = vrot.lane.b32.xlu1 %v1512_v8, %s2055_s4 }
 0x1bc   :  { %v847_v0 = vpop.permute.xlu1 %846  ;;  %1363 = vrot.lane.b32.xlu0 %v1330_v59, %s2054_s30 }
 0x1be   :  { %v677_v8 = vpop.permute.xlu0 %676  ;;  %1365 = vrot.lane.b32.xlu1 %v1334_v29, %s2054_s30  ;;  %v2998_v29 = vrot.slane %v1853_v57, %v2826_v18  ;;  %v1038_v57 = vmul.f32 %v3004_v19, %v2785_v3  ;;  %v1040_v3 = vmul.f32 %v3004_v19, %v2790_v22 }
 0x1bf   :  { %v689_v59 = vsel %vm688_vm5, %v665_v26, %v677_v8  ;;  %v695_v36 = vsel %vm688_vm5, %v677_v8, %v665_v26 }
 0x1c0   :  { %v714_v6 = vmul.f32 %v2974_v51, %v695_v36  ;;  %v715_v7 = vmul.f32 %v2977_v32, %v689_v59  ;;  %v679_v10 = vpop.permute.xlu1 %678  ;;  %1543 = vrot.lane.b32.xlu0 %v1510_v13, %s2055_s4 }
 0x1c1   :  { %v690_v20 = vsel %vm688_vm5, %v667_v31, %v679_v10  ;;  %v696_v21 = vsel %vm688_vm5, %v679_v10, %v667_v31 }
 0x1c2   :  { %v726_v13 = vadd.f32 %v714_v6, %v2860_v46  ;;  %v727_v28 = vadd.f32 %v715_v7, %v2862_v48  ;;  %v716_v30 = vmul.f32 %v2974_v51, %v696_v21  ;;  %v717_v33 = vmul.f32 %v2977_v32, %v690_v20  ;;  %v857_v39 = vpop.permute.xlu0 %856  ;;  %1545 = vrot.lane.b32.xlu1 %v2919_v55, %s2055_s4 }
 0x1c3   :  { %v869_v45 = vsel %vm868_vm6, %v845_v35, %v857_v39  ;;  %v875_v52 = vsel %vm868_vm6, %v857_v39, %v845_v35  ;;  %v1037_v55 = vmul.f32 %v3001_v16, %v2782_v61  ;;  %v1039_v61 = vmul.f32 %v3001_v16, %v2787_v23 }
 0x1c4   :  { %v728_v26 = vadd.f32 %v716_v30, %v2872_v60  ;;  %v729_v46 = vadd.f32 %v717_v33, %v2874_v62  ;;  %v894_v48 = vmul.f32 %v2995_v15, %v875_v52  ;;  %v895_v31 = vmul.f32 %v2998_v29, %v869_v45  ;;  %v859_v34 = vpop.permute.xlu1 %858  ;;  %1355 = vrot.lane.b32.xlu0 %v2930_v12, %s2054_s30 }
 0x1c5   :  { %v870_v35 = vsel %vm868_vm6, %v847_v0, %v859_v34  ;;  %v876_v60 = vsel %vm868_vm6, %v859_v34, %v847_v0 }
 0x1c6   :  { %v906_v62 = vadd.f32 %v894_v48, %v726_v13  ;;  %v907_v2 = vadd.f32 %v895_v31, %v727_v28  ;;  %v896_v8 = vmul.f32 %v2995_v15, %v876_v60  ;;  %v897_v59 = vmul.f32 %v2998_v29, %v870_v35  ;;  %v669_v36 = vpop.permute.xlu0 %668  ;;  %1357 = vrot.lane.b32.xlu1 %v1342_v40, %s2054_s30 }
 0x1c7   :  { %v1041_v35 = vmul.f32 %v3001_v16, %v2794_v54  ;;  %v1042_v60 = vmul.f32 %v3004_v19, %v2797_v4  ;;  %v1043_v54 = vmul.f32 %v3001_v16, %v2799_v1  ;;  %v1044_v4 = vmul.f32 %v3004_v19, %v2802_v24 }
 0x1c8   :  { %v908_v12 = vadd.f32 %v896_v8, %v728_v26  ;;  %v909_v6 = vadd.f32 %v897_v59, %v729_v46  ;;  %v671_v7 = vpop.permute.xlu1 %670  ;;  %1535 = vrot.lane.b32.xlu0 %v2932_v14, %s2055_s4  ;;  %v3043_v0 = vadd.f32 %v1037_v55, %v906_v62  ;;  %v3045_v10 = vadd.f32 %v1038_v57, %v907_v2 }
 0x1ca   :  { %v849_v20 = vpop.permute.xlu0 %848  ;;  %1537 = vrot.lane.b32.xlu1 %v2958_v53, %s2055_s4  ;;  %v3049_v40 = vadd.f32 %v1039_v61, %v908_v12  ;;  %v3051_v23 = vadd.f32 %v1040_v3, %v909_v6 }
 0x1cc   :  { %v851_v21 = vpop.permute.xlu1 %850  ;;  %1367 = vrot.lane.b32.xlu0 %v2939_v25, %s2054_s30 }
 0x1ce   :  { %v681_v22 = vpop.permute.xlu0 %680  ;;  %1369 = vrot.lane.b32.xlu1 %v2956_v27, %s2054_s30 }
 0x1cf   :  { %v691_v14 = vsel %vm688_vm5, %v669_v36, %v681_v22  ;;  %v697_v13 = vsel %vm688_vm5, %v681_v22, %v669_v36 }
 0x1d0   :  { %v718_v53 = vmul.f32 %v2974_v51, %v697_v13  ;;  %v719_v28 = vmul.f32 %v2977_v32, %v691_v14  ;;  %v683_v30 = vpop.permute.xlu1 %682  ;;  %1547 = vrot.lane.b32.xlu0 %v2947_v41, %s2055_s4 }
 0x1d1   :  { %v692_v25 = vsel %vm688_vm5, %v671_v7, %v683_v30  ;;  %v698_v27 = vsel %vm688_vm5, %v683_v30, %v671_v7 }
 0x1d2   :  { %v730_v33 = vadd.f32 %v718_v53, %v2899_v37  ;;  %v731_v39 = vadd.f32 %v719_v28, %v2901_v38  ;;  %v720_v45 = vmul.f32 %v2974_v51, %v698_v27  ;;  %v721_v52 = vmul.f32 %v2977_v32, %v692_v25  ;;  %v861_v26 = vpop.permute.xlu0 %860  ;;  %1549 = vrot.lane.b32.xlu1 %v2965_v44, %s2055_s4 }
 0x1d3   :  { %v871_v41 = vsel %vm868_vm6, %v849_v20, %v861_v26  ;;  %v877_v46 = vsel %vm868_vm6, %v861_v26, %v849_v20  ;;  %v1678_v48 = vpop.f32.mrb[48].mxu0  ;;  %v1688_v31 = vpop.f32.mrb[48].mxu1 }
 0x1d4   :  { %v732_v37 = vadd.f32 %v720_v45, %v2906_v49  ;;  %v733_v38 = vadd.f32 %v721_v52, %v2908_v50  ;;  %v898_v34 = vmul.f32 %v2995_v15, %v877_v46  ;;  %v899_v55 = vmul.f32 %v2998_v29, %v871_v41  ;;  %v863_v57 = vpop.permute.xlu1 %862  ;;  %1707 = vrot.lane.b32.xlu0 %v1678_v48, %s2056_s11  ;;  %v1680_v44 = vpop.f32.mrb[49].mxu0 }
 0x1d5   :  { %v872_v49 = vsel %vm868_vm6, %v851_v21, %v863_v57  ;;  %v878_v50 = vsel %vm868_vm6, %v863_v57, %v851_v21  ;;  %v1682_v62 = vpop.f32.mrb[50].mxu0  ;;  %v1690_v2 = vpop.f32.mrb[49].mxu1 }
 0x1d6   :  { %v910_v8 = vadd.f32 %v898_v34, %v730_v33  ;;  %v911_v59 = vadd.f32 %v899_v55, %v731_v39  ;;  %v900_v36 = vmul.f32 %v2995_v15, %v878_v50  ;;  %v901_v61 = vmul.f32 %v2998_v29, %v872_v49  ;;  %v1692_v3 = vpop.f32.mrb[50].mxu1  ;;  %v673_v12 = vpop.permute.xlu0 %672  ;;  %1709 = vrot.lane.b32.xlu1 %v1682_v62, %s2056_s11  ;;  %v1885_v49 = vld [vmem:[%s3437_s0 + $0x5] ss:$8 sm:$0x3] }
 0x1d7   :  { %v1684_v6 = vpop.f32.mrb[51].mxu0  ;;  %v1694_v7 = vpop.f32.mrb[51].mxu1  ;;  %v1045_v50 = vmul.f32 %v3001_v16, %v2806_v47  ;;  %v1046_v62 = vmul.f32 %v3004_v19, %v2809_v63  ;;  %v1047_v47 = vmul.f32 %v3001_v16, %v2811_v5  ;;  %v1048_v63 = vmul.f32 %v3004_v19, %v2814_v9 }
 0x1d8   :  { %v912_v20 = vadd.f32 %v900_v36, %v732_v37  ;;  %v913_v21 = vadd.f32 %v901_v61, %v733_v38  ;;  %v675_v22 = vpop.permute.xlu1 %674  ;;  %1711 = vrot.lane.b32.xlu0 %v1688_v31, %s2056_s11  ;;  %v3100_v14 = vadd.f32 %v1041_v35, %v910_v8  ;;  %v3102_v13 = vadd.f32 %v1042_v60, %v911_v59 }
 0x1da   :  { %v853_v53 = vpop.permute.xlu0 %852  ;;  %1713 = vrot.lane.b32.xlu1 %v1692_v3, %s2056_s11  ;;  %v3105_v28 = vadd.f32 %v1043_v54, %v912_v20  ;;  %v3107_v1 = vadd.f32 %v1044_v4, %v913_v21  ;;  %v1210_v3 = vrot.slane %v1885_v49, %v2824_v17 }
 0x1db   :  { %v1698_v30 = vpop.f32.mrb[52].mxu1 }
 0x1dc   :  { %v855_v24 = vpop.permute.xlu1 %854  ;;  %1719 = vrot.lane.b32.xlu0 %v1680_v44, %s2056_s11  ;;  %v1700_v25 = vpop.f32.mrb[53].mxu1 }
 0x1dd   :  { %v1702_v27 = vpop.f32.mrb[54].mxu1 }
 0x1de   :  { %v685_v33 = vpop.permute.xlu0 %684  ;;  %1721 = vrot.lane.b32.xlu1 %v1684_v6, %s2056_s11  ;;  %v1704_v39 = vpop.f32.mrb[55].mxu1 }
 0x1df   :  { %v693_v45 = vsel %vm688_vm5, %v673_v12, %v685_v33  ;;  %v699_v52 = vsel %vm688_vm5, %v685_v33, %v673_v12  ;;  %v1214_v12 = vrot.slane %v1885_v49, %v2826_v18 }
 0x1e0   :  { %v722_v26 = vmul.f32 %v2974_v51, %v699_v52  ;;  %v723_v41 = vmul.f32 %v2977_v32, %v693_v45  ;;  %v687_v46 = vpop.permute.xlu1 %686  ;;  %1723 = vrot.lane.b32.xlu0 %v1690_v2, %s2056_s11 }
 0x1e1   :  { %v694_v48 = vsel %vm688_vm5, %v675_v22, %v687_v46  ;;  %v700_v31 = vsel %vm688_vm5, %v687_v46, %v675_v22 }
 0x1e2   :  { %v734_v37 = vadd.f32 %v722_v26, %v2949_v42  ;;  %v735_v38 = vadd.f32 %v723_v41, %v2951_v43  ;;  %v724_v34 = vmul.f32 %v2974_v51, %v700_v31  ;;  %v725_v55 = vmul.f32 %v2977_v32, %v694_v48  ;;  %v865_v57 = vpop.permute.xlu0 %864  ;;  %1725 = vrot.lane.b32.xlu1 %v1694_v7, %s2056_s11 }
 0x1e3   :  { %v873_v44 = vsel %vm868_vm6, %v853_v53, %v865_v57  ;;  %v879_v35 = vsel %vm868_vm6, %v865_v57, %v853_v53 }
 0x1e4   :  { %v736_v60 = vadd.f32 %v724_v34, %v2960_v56  ;;  %v737_v42 = vadd.f32 %v725_v55, %v2962_v58  ;;  %v902_v43 = vmul.f32 %v2995_v15, %v879_v35  ;;  %v903_v51 = vmul.f32 %v2998_v29, %v873_v44  ;;  %v867_v32 = vpop.permute.xlu1 %866  ;;  %1715 = vrot.lane.b32.xlu0 %v1698_v30, %s2056_s11 }
 0x1e5   :  { %v874_v56 = vsel %vm868_vm6, %v855_v24, %v867_v32  ;;  %v880_v58 = vsel %vm868_vm6, %v867_v32, %v855_v24 }
 0x1e6   :  { %v914_v2 = vadd.f32 %v902_v43, %v734_v37  ;;  %v915_v8 = vadd.f32 %v903_v51, %v735_v38  ;;  %v904_v59 = vmul.f32 %v2995_v15, %v880_v58  ;;  %v905_v36 = vmul.f32 %v2998_v29, %v874_v56  ;;  %v1168_v61 = vpop.permute.xlu0 %1167  ;;  %1717 = vrot.lane.b32.xlu1 %v1702_v27, %s2056_s11 }
 0x1e8   :  { %v916_v54 = vadd.f32 %v904_v59, %v736_v60  ;;  %v917_v4 = vadd.f32 %v905_v36, %v737_v42  ;;  %v1170_v6 = vpop.permute.xlu1 %1169  ;;  %1727 = vrot.lane.b32.xlu0 %v1700_v25, %s2056_s11  ;;  %v1057_v15 = vadd.f32 %v1045_v50, %v914_v2  ;;  %v1058_v29 = vadd.f32 %v1046_v62, %v915_v8 }
 0x1ea   :  { %v1180_v7 = vpop.permute.xlu0 %1179  ;;  %1729 = vrot.lane.b32.xlu1 %v1704_v39, %s2056_s11  ;;  %v1059_v20 = vadd.f32 %v1047_v47, %v916_v54  ;;  %v1060_v21 = vadd.f32 %v1048_v63, %v917_v4 }
 0x1eb   :  { %v1192_v5 = vsel %vm1191_vm7, %v1168_v61, %v1180_v7  ;;  %v1198_v9 = vsel %vm1191_vm7, %v1180_v7, %v1168_v61 }
 0x1ec   :  { %v1217_v16 = vmul.f32 %v1210_v3, %v1192_v5  ;;  %v1218_v19 = vmul.f32 %v1214_v12, %v1198_v9  ;;  %v1182_v22 = vpop.permute.xlu1 %1181 }
 0x1ed   :  { %v1193_v53 = vsel %vm1191_vm7, %v1170_v6, %v1182_v22  ;;  %v1199_v30 = vsel %vm1191_vm7, %v1182_v22, %v1170_v6  ;;  %v1901_v22 = vld [vmem:[%s3437_s0 + $0x6] ss:$8 sm:$0x3] }
 0x1ee   :  { %v3168_v24 = vadd.f32 %v1217_v16, %v3043_v0  ;;  %v3171_v25 = vadd.f32 %v1218_v19, %v3045_v10  ;;  %v1219_v27 = vmul.f32 %v1210_v3, %v1193_v53  ;;  %v1220_v33 = vmul.f32 %v1214_v12, %v1199_v30  ;;  %v1172_v39 = vpop.permute.xlu0 %1171  ;;  %v1917_v30 = vld [vmem:[%s3437_s0 + $0x7] ss:$8 sm:$0x3] }
 0x1f0   :  { %v3174_v45 = vadd.f32 %v1219_v27, %v3049_v40  ;;  %v3177_v52 = vadd.f32 %v1220_v33, %v3051_v23  ;;  %v1174_v26 = vpop.permute.xlu1 %1173  ;;  %v3231_v27 = vrot.slane %v1901_v22, %v2824_v17  ;;  %v3234_v33 = vrot.slane %v1901_v22, %v2826_v18 }
 0x1f2   :  { %v1184_v41 = vpop.permute.xlu0 %1183 }
 0x1f3   :  { %v1194_v46 = vsel %vm1191_vm7, %v1172_v39, %v1184_v41  ;;  %v1200_v0 = vsel %vm1191_vm7, %v1184_v41, %v1172_v39 }
 0x1f4   :  { %v1221_v48 = vmul.f32 %v1210_v3, %v1194_v46  ;;  %v1222_v10 = vmul.f32 %v1214_v12, %v1200_v0  ;;  %v1186_v31 = vpop.permute.xlu1 %1185  ;;  %v1933_v46 = vld [vmem:[%s3437_s0 + $0x10] ss:$8 sm:$0x3] }
 0x1f5   :  { %v1195_v37 = vsel %vm1191_vm7, %v1174_v26, %v1186_v31  ;;  %v1201_v40 = vsel %vm1191_vm7, %v1186_v31, %v1174_v26  ;;  %v3254_v31 = vrot.slane %v1917_v30, %v2826_v18 }
 0x1f6   :  { %v3188_v23 = vadd.f32 %v1221_v48, %v3100_v14  ;;  %v3191_v38 = vadd.f32 %v1222_v10, %v3102_v13  ;;  %v1223_v34 = vmul.f32 %v1210_v3, %v1195_v37  ;;  %v1224_v55 = vmul.f32 %v1214_v12, %v1201_v40  ;;  %v1176_v57 = vpop.permute.xlu0 %1175 }
 0x1f7   :  { %v3251_v10 = vrot.slane %v1917_v30, %v2824_v17 }
 0x1f8   :  { %v3194_v44 = vadd.f32 %v1223_v34, %v3105_v28  ;;  %v3197_v35 = vadd.f32 %v1224_v55, %v3107_v1  ;;  %v1178_v60 = vpop.permute.xlu1 %1177 }
 0x1fa   :  { %v1188_v42 = vpop.permute.xlu0 %1187 }
 0x1fb   :  { %v1196_v43 = vsel %vm1191_vm7, %v1176_v57, %v1188_v42  ;;  %v1202_v14 = vsel %vm1191_vm7, %v1188_v42, %v1176_v57  ;;  %v3268_v42 = vrot.slane %v1933_v46, %v2824_v17 }
 0x1fc   :  { %v1225_v51 = vmul.f32 %v1210_v3, %v1196_v43  ;;  %v1226_v13 = vmul.f32 %v1214_v12, %v1202_v14  ;;  %v1190_v32 = vpop.permute.xlu1 %1189  ;;  %v3271_v43 = vrot.slane %v1933_v46, %v2826_v18 }
 0x1fd   :  { %v1197_v49 = vsel %vm1191_vm7, %v1178_v60, %v1190_v32  ;;  %v1203_v28 = vsel %vm1191_vm7, %v1190_v32, %v1178_v60 }
 0x1fe   :  { %v3207_v50 = vadd.f32 %v1225_v51, %v1057_v15  ;;  %v3209_v1 = vadd.f32 %v1226_v13, %v1058_v29  ;;  %v1227_v62 = vmul.f32 %v1210_v3, %v1197_v49  ;;  %v1228_v56 = vmul.f32 %v1214_v12, %v1203_v28 }
 0x200   :  { %v3211_v58 = vadd.f32 %v1227_v62, %v1059_v20  ;;  %v3213_v2 = vadd.f32 %v1228_v56, %v1060_v21 }
 0x216   :  { %v1348_v8 = vpop.permute.xlu0 %1347 }
 0x218   :  { %v1350_v59 = vpop.permute.xlu1 %1349 }
 0x21a   :  { %v1528_v36 = vpop.permute.xlu0 %1527 }
 0x21c   :  { %v1530_v61 = vpop.permute.xlu1 %1529 }
 0x21e   :  { %v1360_v47 = vpop.permute.xlu0 %1359 }
 0x21f   :  { %v1372_v26 = vsel %vm1371_vm8, %v1348_v8, %v1360_v47  ;;  %v1378_v41 = vsel %vm1371_vm8, %v1360_v47, %v1348_v8 }
 0x220   :  { %v1362_v63 = vpop.permute.xlu1 %1361  ;;  %v1397_v55 = vmul.f32 %v3231_v27, %v1372_v26  ;;  %v1398_v57 = vmul.f32 %v3234_v33, %v1378_v41 }
 0x221   :  { %v1373_v0 = vsel %vm1371_vm8, %v1350_v59, %v1362_v63  ;;  %v1379_v48 = vsel %vm1371_vm8, %v1362_v63, %v1350_v59 }
 0x222   :  { %v1540_v54 = vpop.permute.xlu0 %1539  ;;  %v1399_v14 = vmul.f32 %v3231_v27, %v1373_v0  ;;  %v1400_v51 = vmul.f32 %v3234_v33, %v1379_v48 }
 0x223   :  { %v1552_v40 = vsel %vm1551_vm9, %v1528_v36, %v1540_v54  ;;  %v1558_v34 = vsel %vm1551_vm9, %v1540_v54, %v1528_v36 }
 0x224   :  { %v1542_v4 = vpop.permute.xlu1 %1541  ;;  %v1577_v49 = vmul.f32 %v3251_v10, %v1552_v40  ;;  %v1578_v28 = vmul.f32 %v3254_v31, %v1558_v34 }
 0x225   :  { %v1553_v56 = vsel %vm1551_vm9, %v1530_v61, %v1542_v4  ;;  %v1559_v8 = vsel %vm1551_vm9, %v1542_v4, %v1530_v61  ;;  %v1410_v61 = vadd.f32 %v1398_v57, %v3171_v25 }
 0x226   :  { %v1352_v6 = vpop.permute.xlu0 %1351 }
 0x227   :  { %v1590_v46 = vadd.f32 %v1578_v28, %v1410_v61 }
 0x228   :  { %v1354_v7 = vpop.permute.xlu1 %1353 }
 0x22a   :  { %v1532_v15 = vpop.permute.xlu0 %1531 }
 0x22c   :  { %v1534_v5 = vpop.permute.xlu1 %1533 }
 0x22e   :  { %v1364_v29 = vpop.permute.xlu0 %1363 }
 0x22f   :  { %v1374_v13 = vsel %vm1371_vm8, %v1352_v6, %v1364_v29  ;;  %v1380_v32 = vsel %vm1371_vm8, %v1364_v29, %v1352_v6  ;;  %v1409_v29 = vadd.f32 %v1397_v55, %v3168_v24 }
 0x230   :  { %v1366_v9 = vpop.permute.xlu1 %1365  ;;  %v1401_v47 = vmul.f32 %v3231_v27, %v1374_v13  ;;  %v1402_v63 = vmul.f32 %v3234_v33, %v1380_v32 }
 0x231   :  { %v1375_v17 = vsel %vm1371_vm8, %v1354_v7, %v1366_v9  ;;  %v1381_v18 = vsel %vm1371_vm8, %v1366_v9, %v1354_v7  ;;  %v1589_v41 = vadd.f32 %v1577_v49, %v1409_v29 }
 0x232   :  { %v1544_v3 = vpop.permute.xlu0 %1543  ;;  %v1403_v4 = vmul.f32 %v3231_v27, %v1375_v17  ;;  %v1404_v9 = vmul.f32 %v3234_v33, %v1381_v18  ;;  %v1413_v0 = vadd.f32 %v1401_v47, %v3188_v23  ;;  %v1414_v48 = vadd.f32 %v1402_v63, %v3191_v38 }
 0x233   :  { %v1554_v59 = vsel %vm1551_vm9, %v1532_v15, %v1544_v3  ;;  %v1560_v36 = vsel %vm1551_vm9, %v1544_v3, %v1532_v15  ;;  %v1579_v15 = vmul.f32 %v3251_v10, %v1553_v56  ;;  %v1580_v3 = vmul.f32 %v3254_v31, %v1559_v8 }
 0x234   :  { %v1546_v12 = vpop.permute.xlu1 %1545  ;;  %v1581_v22 = vmul.f32 %v3251_v10, %v1554_v59  ;;  %v1582_v30 = vmul.f32 %v3254_v31, %v1560_v36  ;;  %v1415_v34 = vadd.f32 %v1403_v4, %v3194_v44  ;;  %v1416_v55 = vadd.f32 %v1404_v9, %v3197_v35 }
 0x235   :  { %v1555_v54 = vsel %vm1551_vm9, %v1534_v5, %v1546_v12  ;;  %v1561_v6 = vsel %vm1551_vm9, %v1546_v12, %v1534_v5  ;;  %v1411_v5 = vadd.f32 %v1399_v14, %v3174_v45  ;;  %v1412_v12 = vadd.f32 %v1400_v51, %v3177_v52 }
 0x236   :  { %v3215_v20 = vpop.permute.xlu0 %1355  ;;  %v1583_v24 = vmul.f32 %v3251_v10, %v1555_v54  ;;  %v1584_v25 = vmul.f32 %v3254_v31, %v1561_v6  ;;  %v1593_v51 = vadd.f32 %v1581_v22, %v1413_v0  ;;  %v1594_v13 = vadd.f32 %v1582_v30, %v1414_v48 }
 0x237   :  { %v1591_v57 = vadd.f32 %v1579_v15, %v1411_v5  ;;  %v1592_v14 = vadd.f32 %v1580_v3, %v1412_v12 }
 0x238   :  { %v3217_v21 = vpop.permute.xlu1 %1357  ;;  %v1595_v32 = vadd.f32 %v1583_v24, %v1415_v34  ;;  %v1596_v38 = vadd.f32 %v1584_v25, %v1416_v55 }
 0x23a   :  { %v3219_v16 = vpop.permute.xlu0 %1535 }
 0x23c   :  { %v3221_v19 = vpop.permute.xlu1 %1537 }
 0x23e   :  { %v1368_v53 = vpop.permute.xlu0 %1367 }
 0x23f   :  { %v1376_v45 = vsel %vm1371_vm8, %v3215_v20, %v1368_v53  ;;  %v1382_v52 = vsel %vm1371_vm8, %v1368_v53, %v3215_v20 }
 0x240   :  { %v3237_v39 = vpop.permute.xlu1 %1369  ;;  %v1405_v49 = vmul.f32 %v3231_v27, %v1376_v45  ;;  %v1406_v28 = vmul.f32 %v3234_v33, %v1382_v52 }
 0x241   :  { %v1377_v18 = vsel %vm1371_vm8, %v3217_v21, %v3237_v39  ;;  %v1383_v56 = vsel %vm1371_vm8, %v3237_v39, %v3217_v21 }
 0x242   :  { %v3256_v37 = vpop.permute.xlu0 %1547  ;;  %v1407_v12 = vmul.f32 %v3231_v27, %v1377_v18  ;;  %v1408_v24 = vmul.f32 %v3234_v33, %v1383_v56  ;;  %v1418_v34 = vadd.f32 %v1406_v28, %v3209_v1 }
 0x243   :  { %v1556_v6 = vsel %vm1551_vm9, %v3219_v16, %v3256_v37  ;;  %v1562_v21 = vsel %vm1551_vm9, %v3256_v37, %v3219_v16 }
 0x244   :  { %v3264_v60 = vpop.permute.xlu1 %1549  ;;  %v1585_v25 = vmul.f32 %v3251_v10, %v1556_v6  ;;  %v1419_v45 = vadd.f32 %v1407_v12, %v3211_v58 }
 0x245   :  { %v1557_v9 = vsel %vm1551_vm9, %v3221_v19, %v3264_v60  ;;  %v1563_v15 = vsel %vm1551_vm9, %v3264_v60, %v3221_v19 }
 0x246   :  { %v1708_v62 = vpop.permute.xlu0 %1707  ;;  %v1587_v27 = vmul.f32 %v3251_v10, %v1557_v9  ;;  %v1588_v33 = vmul.f32 %v3254_v31, %v1563_v15  ;;  %v1420_v10 = vadd.f32 %v1408_v24, %v3213_v2 }
 0x248   :  { %v1710_v7 = vpop.permute.xlu1 %1709 }
 0x24a   :  { %v1712_v26 = vpop.permute.xlu0 %1711 }
 0x24c   :  { %v1714_v40 = vpop.permute.xlu1 %1713 }
 0x24e   :  { %v1720_v23 = vpop.permute.xlu0 %1719 }
 0x24f   :  { %v1732_v44 = vsel %vm1731_vm10, %v1708_v62, %v1720_v23  ;;  %v1738_v35 = vsel %vm1731_vm10, %v1720_v23, %v1708_v62  ;;  %v1600_v23 = vadd.f32 %v1588_v33, %v1420_v10 }
 0x250   :  { %v1757_v17 = vmul.f32 %v3268_v42, %v1732_v44  ;;  %v1758_v20 = vmul.f32 %v3271_v43, %v1738_v35  ;;  %v1722_v53 = vpop.permute.xlu1 %1721 }
 0x251   :  { %v1733_v62 = vsel %vm1731_vm10, %v1710_v7, %v1722_v53  ;;  %v1739_v8 = vsel %vm1731_vm10, %v1722_v53, %v1710_v7 }
 0x252   :  { %v1769_v59 = vadd.f32 %v1757_v17, %v1589_v41  ;;  %v1770_v36 = vadd.f32 %v1758_v20, %v1590_v46  ;;  %v1759_v47 = vmul.f32 %v3268_v42, %v1733_v62  ;;  %v1760_v63 = vmul.f32 %v3271_v43, %v1739_v8  ;;  %v1724_v54 = vpop.permute.xlu0 %1723 }
 0x253   :  { %v1734_v39 = vsel %vm1731_vm10, %v1712_v26, %v1724_v54  ;;  %v1740_v7 = vsel %vm1731_vm10, %v1724_v54, %v1712_v26  ;;  %v1586_v41 = vmul.f32 %v3254_v31, %v1562_v21 }
 0x254   :  { %1781 = vst [vmem:[%s3438_s3] sm:$0xff] %v1769_v59  ;;  %1782 = vst.msk [vmem:[%s3438_s3 + $0x8] sm:$0xff] %vm136_vm0, %v1770_v36  ;;  %v1771_v29 = vadd.f32 %v1759_v47, %v1591_v57  ;;  %v1772_v61 = vadd.f32 %v1760_v63, %v1592_v14  ;;  %v1761_v4 = vmul.f32 %v3268_v42, %v1734_v39  ;;  %v1726_v37 = vpop.permute.xlu1 %1725 }
 0x255   :  { %v1762_v16 = vmul.f32 %v3271_v43, %v1740_v7  ;;  %v1735_v3 = vsel %vm1731_vm10, %v1714_v40, %v1726_v37  ;;  %v1741_v22 = vsel %vm1731_vm10, %v1726_v37, %v1714_v40  ;;  %v1417_v40 = vadd.f32 %v1405_v49, %v3207_v50 }
 0x256   :  { %1783 = vst [vmem:[%s3438_s3 + $0x10] sm:$0xff] %v1771_v29  ;;  %1784 = vst.msk [vmem:[%s3438_s3 + $0x18] sm:$0xff] %vm136_vm0, %v1772_v61  ;;  %v1773_v30 = vadd.f32 %v1761_v4, %v1593_v51  ;;  %v1763_v5 = vmul.f32 %v3268_v42, %v1735_v3  ;;  %v1764_v19 = vmul.f32 %v3271_v43, %v1741_v22  ;;  %v1716_v60 = vpop.permute.xlu0 %1715 }
 0x257   :  { %v1774_v26 = vadd.f32 %v1762_v16, %v1594_v13  ;;  %v1597_v1 = vadd.f32 %v1585_v25, %v1417_v40  ;;  %v1598_v52 = vadd.f32 %v1586_v41, %v1418_v34  ;;  %v1599_v13 = vadd.f32 %v1587_v27, %v1419_v45 }
 0x258   :  { %1785 = vst [vmem:[%s3438_s3 + $0x20] sm:$0xff] %v1773_v30  ;;  %v1775_v46 = vadd.f32 %v1763_v5, %v1595_v32  ;;  %v1776_v0 = vadd.f32 %v1764_v19, %v1596_v38  ;;  %v1718_v48 = vpop.permute.xlu1 %1717 }
 0x259   :  { %1786 = vst.msk [vmem:[%s3438_s3 + $0x28] sm:$0xff] %vm136_vm0, %v1774_v26 }
 0x25a   :  { %1787 = vst [vmem:[%s3438_s3 + $0x30] sm:$0xff] %v1775_v46  ;;  %1788 = vst.msk [vmem:[%s3438_s3 + $0x38] sm:$0xff] %vm136_vm0, %v1776_v0  ;;  %v1728_v55 = vpop.permute.xlu0 %1727 }
 0x25b   :  { %v1736_v31 = vsel %vm1731_vm10, %v1716_v60, %v1728_v55  ;;  %v1742_v50 = vsel %vm1731_vm10, %v1728_v55, %v1716_v60 }
 0x25c   :  { %v1765_v57 = vmul.f32 %v3268_v42, %v1736_v31  ;;  %v1766_v14 = vmul.f32 %v3271_v43, %v1742_v50  ;;  %v1730_v51 = vpop.permute.xlu1 %1729 }
 0x25d   :  { %v1737_v58 = vsel %vm1731_vm10, %v1718_v48, %v1730_v51  ;;  %v1743_v2 = vsel %vm1731_vm10, %v1730_v51, %v1718_v48 }
 0x25e   :  { %v1777_v32 = vadd.f32 %v1765_v57, %v1597_v1  ;;  %v1778_v38 = vadd.f32 %v1766_v14, %v1598_v52  ;;  %v1767_v44 = vmul.f32 %v3268_v42, %v1737_v58  ;;  %v1768_v35 = vmul.f32 %v3271_v43, %v1743_v2 }
 0x260   :  { %1789 = vst [vmem:[%s3438_s3 + $0x40] sm:$0xff] %v1777_v32  ;;  %1790 = vst.msk [vmem:[%s3438_s3 + $0x48] sm:$0xff] %vm136_vm0, %v1778_v38  ;;  %v1779_v49 = vadd.f32 %v1767_v44, %v1599_v13  ;;  %v1780_v28 = vadd.f32 %v1768_v35, %v1600_v23 }
 0x262   :  { %1791 = vst [vmem:[%s3438_s3 + $0x50] sm:$0xff] %v1779_v49  ;;  %1792 = vst.msk [vmem:[%s3438_s3 + $0x58] sm:$0xff] %vm136_vm0, %v1780_v28 }

</bundles_post_ra>
